<compile_context>
chip_gen: v7x
topology: tpu7x:2x2x1
jax: 0.10.0
libtpu: 0.0.40
codegen_flags: <defaults>
</compile_context>

<pallas_src>
import functools

import jax
import jax.numpy as jnp
from jax.experimental import pallas as pl
from jax.experimental.pallas import tpu as pltpu

CONFIG = dict(n_words=100, emb_size=32, lstm_dims=16, n_hidden=32,
              margin=0.6, sim_measure="cos")


def _sigmoid(z):
    # One EUP tanh + cheap VPU ops instead of exp + divide.
    return 0.5 * jnp.tanh(0.5 * z) + 0.5


# ----------------------------------------------------------------------------
# Pallas kernel 1: fused bidirectional masked LSTM for ALL sequence encoders.
# grid=(4,) over encoders; per step the whole [S,B,E] sequence slab and the
# packed weight slab are VMEM resident and the recurrence is fully unrolled.
# ----------------------------------------------------------------------------
def _fused_bilstm_kernel(seq_len, emb_size, lstm_dims,
                         emb_ref, lens_ref, w_ref, out_ref):
    """One grid step == one complete bidirectional LSTM encoder.

    emb_ref : [S, B, E]   time-major embedded sequence (VMEM resident)
    lens_ref: [B, 1]      int32 valid lengths
    w_ref   : [2E+2L+8, 8L] packed weights (8-row aligned sections):
                rows 0:E      x -> gates, forward-direction columns
                rows E:2E     x -> gates, backward-direction columns
                rows 2E:2E+2L h -> gates, block-diagonal (fwd rows / bwd rows)
                row  2E+2L    packed bias (7 zero pad rows follow)
              gate column layout (width 8L): [i_f|i_b|f_f|f_b|o_f|o_b|g_f|g_b]
    out_ref : [B, 2L]     final hidden state [h_fwd | h_bwd]
    """
    f32 = jnp.float32
    S, E, L = seq_len, emb_size, lstm_dims
    B = out_ref.shape[0]

    # Weight sections loaded once; every start row is 8-aligned (free views).
    w_xf = w_ref[0:E, :]
    w_xb = w_ref[E:2 * E, :]
    w_h = w_ref[2 * E:2 * E + 2 * L, :]
    b = w_ref[2 * E + 2 * L:2 * E + 2 * L + 1, :]
    lens = lens_ref[...]                                        # [B, 1] int32
    lane = jax.lax.broadcasted_iota(jnp.int32, (B, 2 * L), 1)   # fwd lanes < L

    h = jnp.zeros((B, 2 * L), f32)                              # [h_f | h_b]
    c = jnp.zeros((B, 2 * L), f32)                              # [c_f | c_b]

    # Statically unrolled recurrence over the VMEM-resident slab (equivalent to
    # lax.fori_loop(..., unroll=True); static t keeps time slices free views).
    for t in range(S):
        x_f = emb_ref[t]                                        # [B, E]
        x_b = emb_ref[S - 1 - t]                                # [B, E]
        gates = (jnp.dot(x_f, w_xf, preferred_element_type=f32)
                 + jnp.dot(x_b, w_xb, preferred_element_type=f32)
                 + jnp.dot(h, w_h, preferred_element_type=f32)
                 + b)                                           # [B, 8L] lane-dense
        ifo = _sigmoid(gates[:, 0:6 * L])                       # one EUP push
        i_g = ifo[:, 0:2 * L]
        f_g = ifo[:, 2 * L:4 * L]
        o_g = ifo[:, 4 * L:6 * L]
        g_g = jnp.tanh(gates[:, 6 * L:8 * L])
        c_new = f_g * c + i_g * g_g
        h_new = o_g * jnp.tanh(c_new)
        # Length mask: forward half processes position t, backward half S-1-t
        # (matches packed-sequence semantics regardless of padding).
        pos = jnp.where(lane < L, t, S - 1 - t)
        valid = (pos < lens).astype(f32)                        # [B, 2L]
        h = valid * h_new + (1.0 - valid) * h
        c = valid * c_new + (1.0 - valid) * c

    out_ref[...] = h


def fused_bilstm_pallas(emb_all, lens_all, w_slabs, S, E, L):
    """emb_all [4,S,B,E], lens_all [4,B,1], w_slabs [4, 2E+2L+8, 8L] -> [4,B,2L]."""
    f32 = jnp.float32
    n_enc, _, B, _ = emb_all.shape
    wr = w_slabs.shape[1]
    kernel = functools.partial(_fused_bilstm_kernel, S, E, L)
    return pl.pallas_call(
        kernel,
        grid=(n_enc,),
        out_shape=jax.ShapeDtypeStruct((n_enc, B, 2 * L), f32),
        in_specs=[
            pl.BlockSpec((None, S, B, E), lambda e: (e, 0, 0, 0)),   # sequence slab
            pl.BlockSpec((None, B, 1), lambda e: (e, 0, 0)),         # lengths
            pl.BlockSpec((None, wr, 8 * L), lambda e: (e, 0, 0)),    # weight slab
        ],
        out_specs=pl.BlockSpec((None, B, 2 * L), lambda e: (e, 0, 0)),
        compiler_params=pltpu.CompilerParams(
            dimension_semantics=("parallel",)),      # v7x: 2 TCs split the 4 encoders
    )(emb_all, lens_all, w_slabs)


def bow_encode(ids, lens, embedding):
    """BOWEncoder: embedding + masked max-pool (plain-JAX glue)."""
    # TODO(synk): gather + max-pool kept as XLA glue; no clean Pallas gather win
    # for a tiny embedding table.
    emb = embedding[ids]                                        # [B, S, E]
    S = ids.shape[1]
    mask = (jnp.arange(S)[None, :] < lens[:, None])[:, :, None]
    neg = jnp.full_like(emb, -1e9)
    return jnp.max(jnp.where(mask, emb, neg), axis=1)           # [B, E]


# ----------------------------------------------------------------------------
# Pallas kernel 2: the whole JointEmbeder.forward math on encoder outputs.
#   x_ref: [B, 5H]  = [name_repr | tok_repr | graph_repr | desc_anchor | desc_neg]
#   w_ref: [11H+24, 5H] parameter slab (block-diag proj / atten / fuse + biases)
# ----------------------------------------------------------------------------
def _jointemb_kernel(margin, batch, hidden, x_ref, w_ref, loss_ref):
    f32 = jnp.float32
    B, H = batch, hidden
    W = 5 * H

    x = x_ref[...]                                              # [B, 5H]
    w_proj = w_ref[0:W, :]                                      # block-diag [5H, 5H]
    w_att = w_ref[W:W + 3 * H, :]                               # [3H, 5H], cols 0..2 live
    w_fuse = w_ref[W + 3 * H:W + 6 * H, :]                      # [3H, 5H], cols 0..H-1 live
    rb = W + 6 * H                                              # 8-row-aligned bias slots
    b_proj = w_ref[rb:rb + 1, :]
    b_att = w_ref[rb + 8:rb + 9, :]
    b_fuse = w_ref[rb + 16:rb + 17, :]

    # All five Linear projections (name/tok/graph + both descriptions) in ONE
    # MXU pass against the block-diagonal weight -- no zero-padded rows.
    h_all = jnp.dot(x, w_proj, preferred_element_type=f32) + b_proj     # [B, 5H]
    h_code = h_all[:, 0:3 * H]                                  # name_h|tok_h|graph_h
    da_h = h_all[:, 3 * H:4 * H]                                # w_desc(desc_anchor)
    dn_h = h_all[:, 4 * H:5 * H]                                # w_desc(desc_neg)

    # Attention logits: one tanh + one matmul against block-diagonal w_atten.
    # TODO(synk): F.dropout(p=0.25) treated as identity (eval / inference mode).
    scores = jnp.dot(jnp.tanh(h_code), w_att, preferred_element_type=f32) + b_att
    s0, s1, s2 = scores[:, 0:1], scores[:, 1:2], scores[:, 2:3]         # [B,1] each

    # Softmax over the 3 logits; only column 0 is ever consumed (faithful to the
    # original module, which scales all three branches by atten_weight[:, 0]).
    m = jnp.maximum(jnp.maximum(s0, s1), s2)
    e0, e1, e2 = jnp.exp(s0 - m), jnp.exp(s1 - m), jnp.exp(s2 - m)
    w0 = e0 * pl.reciprocal(e0 + e1 + e2, approx=True)                  # [B, 1]

    # bmm(w0, raw_repr) == broadcast-scale of the RAW encoder outputs; fuse() is
    # a single matmul against the (column-padded) [3H, 5H] fuse weight.
    att_in = w0 * x[:, 0:3 * H]                                         # [B, 3H]
    fused = jnp.dot(att_in, w_fuse, preferred_element_type=f32) + b_fuse
    code = jnp.tanh(fused[:, 0:H])                                      # [B, H]

    def cos_sim(a, bb):
        eps = 1e-8
        d = jnp.sum(a * bb, axis=1, keepdims=True)
        na2 = jnp.maximum(jnp.sum(a * a, axis=1, keepdims=True), eps * eps)
        nb2 = jnp.maximum(jnp.sum(bb * bb, axis=1, keepdims=True), eps * eps)
        # == d / (max(||a||, eps) * max(||b||, eps)), torch F.cosine_similarity
        return d * jax.lax.rsqrt(na2 * nb2)                             # [B, 1]

    anchor_sim = cos_sim(code, da_h)
    neg_sim = cos_sim(code, dn_h)

    diff = jnp.maximum(margin - anchor_sim + neg_sim, 1e-6)             # [B, 1]
    loss = jnp.sum(diff, axis=0, keepdims=True) * (1.0 / batch)         # [1, 1]
    loss_ref[...] = jnp.broadcast_to(loss, loss_ref.shape)              # lane-dense


def jointemb_loss_pallas(x_all, joint_slab, batch, hidden, margin):
    f32 = jnp.float32
    kernel = functools.partial(_jointemb_kernel, float(margin), batch, hidden)
    vmem = pltpu.MemorySpace.VMEM
    out = pl.pallas_call(
        kernel,
        out_shape=jax.ShapeDtypeStruct((1, 4 * hidden), f32),
        in_specs=[pl.BlockSpec(memory_space=vmem),
                  pl.BlockSpec(memory_space=vmem)],
        out_specs=pl.BlockSpec(memory_space=vmem),
    )(x_all, joint_slab)
    return out[0, 0]


# ----------------------------------------------------------------------------
# One-time host-side packing of all weights into MXU/DMA-friendly slabs.
# Call once per parameter update (or once at init for inference); NOT per step.
# ----------------------------------------------------------------------------
def prepare_packed_params(params, cfg):
    f32 = jnp.float32
    E, L, H = cfg["emb_size"], cfg["lstm_dims"], cfg["n_hidden"]

    def place_gate_cols(w, direction):
        # w: [R, 4L] in torch gate order (i, f, g, o); place into the packed
        # [R, 8L] column layout [i_f|i_b|f_f|f_b|o_f|o_b|g_f|g_b].
        out = jnp.zeros((w.shape[0], 8 * L), f32)
        for src, dst in ((0, 0), (L, 2 * L), (3 * L, 4 * L), (2 * L, 6 * L)):
            out = out.at[:, dst + direction * L:dst + (direction + 1) * L].set(
                w[:, src:src + L].astype(f32))
        return out

    def bilstm_slab(p):
        w_x = jnp.concatenate([place_gate_cols(p["w_ih_f"], 0),
                               place_gate_cols(p["w_ih_b"], 1)], axis=0)     # [2E, 8L]
        w_h = jnp.concatenate([place_gate_cols(p["w_hh_f"], 0),
                               place_gate_cols(p["w_hh_b"], 1)], axis=0)     # [2L, 8L]
        b = (place_gate_cols(p["b_f"].reshape(1, 4 * L), 0)
             + place_gate_cols(p["b_b"].reshape(1, 4 * L), 1))               # [1, 8L]
        b_slot = jnp.zeros((8, 8 * L), f32).at[0:1, :].set(b)                # 8-row slot
        return jnp.concatenate([w_x, w_h, b_slot], axis=0)                   # [2E+2L+8, 8L]

    # name, graphseq, desc_anchor, desc_neg (desc slab duplicated -> no rebuild).
    lstm_slabs = jnp.stack([bilstm_slab(params["name_enc"]),
                            bilstm_slab(params["graph_enc"]),
                            bilstm_slab(params["desc_enc"]),
                            bilstm_slab(params["desc_enc"])], axis=0)

    # Joint slab: [5H(w_proj) + 3H(w_att) + 3H(w_fuse) + 3*8(bias slots), 5H].
    W = 5 * H
    w_proj = jnp.zeros((W, W), f32)
    w_proj = w_proj.at[0:H, 0:H].set(params["w_name"])
    w_proj = w_proj.at[H:2 * H, H:2 * H].set(params["w_tok"])
    w_proj = w_proj.at[2 * H:3 * H, 2 * H:3 * H].set(params["w_graphseq"])
    w_proj = w_proj.at[3 * H:4 * H, 3 * H:4 * H].set(params["w_desc"])
    w_proj = w_proj.at[4 * H:5 * H, 4 * H:5 * H].set(params["w_desc"])

    w_att = jnp.zeros((3 * H, W), f32)
    w_att = w_att.at[0:H, 0:1].set(params["w_atten"])
    w_att = w_att.at[H:2 * H, 1:2].set(params["w_atten"])
    w_att = w_att.at[2 * H:3 * H, 2:3].set(params["w_atten"])

    w_fuse = jnp.zeros((3 * H, W), f32).at[:, 0:H].set(params["w_fuse"])

    b_proj = jnp.zeros((8, W), f32).at[0, :].set(
        jnp.concatenate([params["b_name"], params["b_tok"], params["b_graphseq"],
                         params["b_desc"], params["b_desc"]]))
    b_att = jnp.zeros((8, W), f32).at[0, :].set(
        jnp.broadcast_to(params["b_atten"], (W,)))
    b_fuse = jnp.zeros((8, W), f32).at[0, 0:H].set(params["b_fuse"])

    joint_slab = jnp.concatenate([w_proj, w_att, w_fuse, b_proj, b_att, b_fuse],
                                 axis=0).astype(f32)                         # [11H+24, 5H]

    return dict(lstm_slabs=lstm_slabs, joint_slab=joint_slab,
                name_embedding=params["name_enc"]["embedding"].astype(f32),
                graph_embedding=params["graph_enc"]["embedding"].astype(f32),
                desc_embedding=params["desc_enc"]["embedding"].astype(f32),
                tok_embedding=params["tok_enc"]["embedding"].astype(f32))


# ----------------------------------------------------------------------------
# Parameter init (JointEmbeder.init_weights: uniform(-0.1, 0.1), zero biases)
# plus canonical DeepCS SeqEncoder / BOWEncoder parameters.
# ----------------------------------------------------------------------------
def init_params(key, cfg):
    nw, E, L, H = cfg["n_words"], cfg["emb_size"], cfg["lstm_dims"], cfg["n_hidden"]
    keys = iter(jax.random.split(key, 64))

    def u(shape, scale=0.1):
        return jax.random.uniform(next(keys), shape, jnp.float32, -scale, scale)

    def seq_enc_params():
        return dict(embedding=u((nw, E)),
                    w_ih_f=u((E, 4 * L)), w_hh_f=u((L, 4 * L)),
                    b_f=jnp.zeros((4 * L,), jnp.float32),
                    w_ih_b=u((E, 4 * L)), w_hh_b=u((L, 4 * L)),
                    b_b=jnp.zeros((4 * L,), jnp.float32))

    return dict(
        name_enc=seq_enc_params(),
        tok_enc=dict(embedding=u((nw, E))),
        graph_enc=seq_enc_params(),
        desc_enc=seq_enc_params(),
        w_name=u((2 * L, H)), b_name=jnp.zeros((H,), jnp.float32),
        w_tok=u((E, H)), b_tok=jnp.zeros((H,), jnp.float32),
        w_graphseq=u((2 * L, H)), b_graphseq=jnp.zeros((H,), jnp.float32),
        w_desc=u((2 * L, H)), b_desc=jnp.zeros((H,), jnp.float32),
        w_atten=u((H, 1)), b_atten=jnp.zeros((1,), jnp.float32),
        w_fuse=u((3 * H, H)), b_fuse=jnp.zeros((H,), jnp.float32),
    )


def jointemb_forward(packed, cfg,
                     name, name_len, tokens, tok_len, graphseq, graphseq_len,
                     desc_anchor, desc_anchor_len, desc_neg, desc_neg_len):
    f32 = jnp.float32
    E, L, H = cfg["emb_size"], cfg["lstm_dims"], cfg["n_hidden"]
    # The original module reshapes the RAW encoder outputs to (B, 1, n_hidden),
    # which requires emb_size == n_hidden == 2*lstm_dims; we honor that.
    assert 2 * L == H and E == H
    B = name.shape[0]

    # Pad all recurrent sequences to one common length; the in-kernel length
    # mask makes padded positions no-ops, so this is semantics-preserving.
    S = max(name.shape[1], graphseq.shape[1], desc_anchor.shape[1], desc_neg.shape[1])

    def ids_time_major(ids):
        ids = jnp.pad(ids, ((0, 0), (0, S - ids.shape[1])))
        return ids.T                           # tiny int transpose (no activation copy)

    # Per-encoder embedding gathers (plain-JAX; tables are tiny), emitted
    # time-major so the kernel indexes the leading (untiled) axis for free.
    emb_all = jnp.stack([
        packed["name_embedding"][ids_time_major(name)],
        packed["graph_embedding"][ids_time_major(graphseq)],
        packed["desc_embedding"][ids_time_major(desc_anchor)],
        packed["desc_embedding"][ids_time_major(desc_neg)],
    ], axis=0).astype(f32)                                       # [4, S, B, E]
    lens_all = jnp.stack([name_len, graphseq_len, desc_anchor_len, desc_neg_len],
                         axis=0).astype(jnp.int32).reshape(4, B, 1)

    # ONE pallas_call for all four bi-LSTM encoders.
    seq_reprs = fused_bilstm_pallas(emb_all, lens_all, packed["lstm_slabs"], S, E, L)

    tok_repr = bow_encode(tokens, tok_len, packed["tok_embedding"])          # [B, E]

    # Packed activations for the joint kernel: [name | tok | graph | desc_a | desc_n].
    x_all = jnp.concatenate([seq_reprs[0], tok_repr, seq_reprs[1],
                             seq_reprs[2], seq_reprs[3]], axis=1).astype(f32)  # [B, 5H]
    return jointemb_loss_pallas(x_all, packed["joint_slab"], B, H, cfg["margin"])


if __name__ == "__main__":
    cfg = CONFIG
    key = jax.random.PRNGKey(0)
    kp, kd = jax.random.split(key)
    params = init_params(kp, cfg)
    packed = prepare_packed_params(params, cfg)   # one-time packing, NOT per forward

    B = 2
    ks = jax.random.split(kd, 5)
    name = jax.random.randint(ks[0], (B, 6), 0, cfg["n_words"], jnp.int32)
    tokens = jax.random.randint(ks[1], (B, 10), 0, cfg["n_words"], jnp.int32)
    graphseq = jax.random.randint(ks[2], (B, 8), 0, cfg["n_words"], jnp.int32)
    desc_anchor = jax.random.randint(ks[3], (B, 8), 0, cfg["n_words"], jnp.int32)
    desc_neg = jax.random.randint(ks[4], (B, 8), 0, cfg["n_words"], jnp.int32)
    name_len = jnp.array([6, 4], jnp.int32)
    tok_len = jnp.array([10, 7], jnp.int32)
    graphseq_len = jnp.array([8, 5], jnp.int32)
    desc_anchor_len = jnp.array([8, 6], jnp.int32)
    desc_neg_len = jnp.array([7, 8], jnp.int32)

    @jax.jit
    def fwd(packed, name, name_len, tokens, tok_len, graphseq, graphseq_len,
            desc_anchor, desc_anchor_len, desc_neg, desc_neg_len):
        return jointemb_forward(packed, cfg, name, name_len, tokens, tok_len,
                                graphseq, graphseq_len, desc_anchor,
                                desc_anchor_len, desc_neg, desc_neg_len)

    loss = fwd(packed, name, name_len, tokens, tok_len, graphseq, graphseq_len,
               desc_anchor, desc_anchor_len, desc_neg, desc_neg_len)
    jax.block_until_ready(loss)
    print("KERNEL_OK")
</pallas_src>

<mosaic_0001>
module attributes {stable_mosaic.version = 11 : i64} {
  func.func @_fused_bilstm_kernel(%arg0: i32, %arg1: memref<1x8x2x32xf32, #tpu.memory_space<vmem>>, %arg2: memref<1x2x1xi32, #tpu.memory_space<vmem>>, %arg3: memref<1x104x128xf32, #tpu.memory_space<vmem>>, %arg4: memref<1x2x32xf32, #tpu.memory_space<vmem>>) attributes {dimension_semantics = [#tpu.dimension_semantics<parallel>], iteration_bounds = array<i64: 4>, scalar_prefetch = 0 : i64, scratch_operands = 0 : i64, tpu.core_type = #tpu.core_type<tc>, window_params = [{transform_indices = @transform_0, window_bounds = array<i64: 1, 8, 2, 32>}, {transform_indices = @transform_1, window_bounds = array<i64: 1, 2, 1>}, {transform_indices = @transform_2, window_bounds = array<i64: 1, 104, 128>}, {transform_indices = @transform_3, window_bounds = array<i64: 1, 2, 32>}]} {
    %c0 = arith.constant 0 : index
    %c0_0 = arith.constant 0 : index
    %c0_1 = arith.constant 0 : index
    %0 = vector.load %arg3[%c0, %c0_0, %c0_1] : memref<1x104x128xf32, #tpu.memory_space<vmem>>, vector<1x32x128xf32>
    %1 = vector.shape_cast %0 : vector<1x32x128xf32> to vector<32x128xf32>
    %c0_2 = arith.constant 0 : index
    %c32 = arith.constant 32 : index
    %c0_3 = arith.constant 0 : index
    %2 = vector.load %arg3[%c0_2, %c32, %c0_3] : memref<1x104x128xf32, #tpu.memory_space<vmem>>, vector<1x32x128xf32>
    %3 = vector.shape_cast %2 : vector<1x32x128xf32> to vector<32x128xf32>
    %c0_4 = arith.constant 0 : index
    %c64 = arith.constant 64 : index
    %c0_5 = arith.constant 0 : index
    %4 = vector.load %arg3[%c0_4, %c64, %c0_5] : memref<1x104x128xf32, #tpu.memory_space<vmem>>, vector<1x32x128xf32>
    %5 = vector.shape_cast %4 : vector<1x32x128xf32> to vector<32x128xf32>
    %c0_6 = arith.constant 0 : index
    %c96 = arith.constant 96 : index
    %c0_7 = arith.constant 0 : index
    %6 = vector.load %arg3[%c0_6, %c96, %c0_7] : memref<1x104x128xf32, #tpu.memory_space<vmem>>, vector<1x1x128xf32>
    %7 = vector.shape_cast %6 : vector<1x1x128xf32> to vector<1x128xf32>
    %c0_8 = arith.constant 0 : index
    %c0_9 = arith.constant 0 : index
    %c0_10 = arith.constant 0 : index
    %8 = vector.load %arg2[%c0_8, %c0_9, %c0_10] : memref<1x2x1xi32, #tpu.memory_space<vmem>>, vector<1x2x1xi32>
    %9 = vector.shape_cast %8 : vector<1x2x1xi32> to vector<2x1xi32>
    %10 = tpu.iota {dimensions = array<i32: 1>} : vector<2x32xi32>
    %cst = arith.constant 0.000000e+00 : f32
    %11 = vector.broadcast %cst : f32 to vector<2x32xf32>
    %cst_11 = arith.constant 0.000000e+00 : f32
    %12 = vector.broadcast %cst_11 : f32 to vector<2x32xf32>
    %c0_12 = arith.constant 0 : index
    %c0_13 = arith.constant 0 : index
    %c0_14 = arith.constant 0 : index
    %c0_15 = arith.constant 0 : index
    %13 = vector.load %arg1[%c0_12, %c0_13, %c0_14, %c0_15] : memref<1x8x2x32xf32, #tpu.memory_space<vmem>>, vector<1x1x2x32xf32>
    %14 = vector.shape_cast %13 : vector<1x1x2x32xf32> to vector<2x32xf32>
    %c0_16 = arith.constant 0 : index
    %c7 = arith.constant 7 : index
    %c0_17 = arith.constant 0 : index
    %c0_18 = arith.constant 0 : index
    %15 = vector.load %arg1[%c0_16, %c7, %c0_17, %c0_18] : memref<1x8x2x32xf32, #tpu.memory_space<vmem>>, vector<1x1x2x32xf32>
    %16 = vector.shape_cast %15 : vector<1x1x2x32xf32> to vector<2x32xf32>
    %cst_19 = arith.constant dense<0.000000e+00> : vector<2x128xf32>
    %17 = tpu.matmul %14, %1, %cst_19 {dimension_numbers = #tpu.dot_dimension_numbers<[1], [0], [0], [1], [0, 0, 1, 1], [], []>} : vector<2x32xf32>, vector<32x128xf32>, vector<2x128xf32> -> vector<2x128xf32>
    %cst_20 = arith.constant dense<0.000000e+00> : vector<2x128xf32>
    %18 = tpu.matmul %16, %3, %cst_20 {dimension_numbers = #tpu.dot_dimension_numbers<[1], [0], [0], [1], [0, 0, 1, 1], [], []>} : vector<2x32xf32>, vector<32x128xf32>, vector<2x128xf32> -> vector<2x128xf32>
    %19 = arith.addf %17, %18 : vector<2x128xf32>
    %cst_21 = arith.constant dense<0.000000e+00> : vector<2x128xf32>
    %20 = tpu.matmul %11, %5, %cst_21 {dimension_numbers = #tpu.dot_dimension_numbers<[1], [0], [0], [1], [0, 0, 1, 1], [], []>} : vector<2x32xf32>, vector<32x128xf32>, vector<2x128xf32> -> vector<2x128xf32>
    %21 = arith.addf %19, %20 : vector<2x128xf32>
    %22 = vector.broadcast %7 : vector<1x128xf32> to vector<2x128xf32>
    %23 = arith.addf %21, %22 : vector<2x128xf32>
    %24 = vector.extract_strided_slice %23 {offsets = [0, 0], sizes = [2, 96], strides = [1, 1]} : vector<2x128xf32> to vector<2x96xf32>
    %cst_22 = arith.constant 5.000000e-01 : f32
    %25 = vector.broadcast %cst_22 : f32 to vector<2x96xf32>
    %26 = arith.mulf %25, %24 : vector<2x96xf32>
    %27 = math.tanh %26 : vector<2x96xf32>
    %cst_23 = arith.constant 5.000000e-01 : f32
    %28 = vector.broadcast %cst_23 : f32 to vector<2x96xf32>
    %29 = arith.mulf %28, %27 : vector<2x96xf32>
    %cst_24 = arith.constant 5.000000e-01 : f32
    %30 = vector.broadcast %cst_24 : f32 to vector<2x96xf32>
    %31 = arith.addf %29, %30 : vector<2x96xf32>
    %32 = vector.extract_strided_slice %31 {offsets = [0, 0], sizes = [2, 32], strides = [1, 1]} : vector<2x96xf32> to vector<2x32xf32>
    %33 = vector.extract_strided_slice %31 {offsets = [0, 32], sizes = [2, 32], strides = [1, 1]} : vector<2x96xf32> to vector<2x32xf32>
    %34 = vector.extract_strided_slice %31 {offsets = [0, 64], sizes = [2, 32], strides = [1, 1]} : vector<2x96xf32> to vector<2x32xf32>
    %35 = vector.extract_strided_slice %23 {offsets = [0, 96], sizes = [2, 32], strides = [1, 1]} : vector<2x128xf32> to vector<2x32xf32>
    %36 = math.tanh %35 : vector<2x32xf32>
    %37 = arith.mulf %33, %12 : vector<2x32xf32>
    %38 = arith.mulf %32, %36 : vector<2x32xf32>
    %39 = arith.addf %37, %38 : vector<2x32xf32>
    %40 = math.tanh %39 : vector<2x32xf32>
    %41 = arith.mulf %34, %40 : vector<2x32xf32>
    %c16_i32 = arith.constant 16 : i32
    %42 = vector.broadcast %c16_i32 : i32 to vector<2x32xi32>
    %43 = arith.cmpi slt, %10, %42 : vector<2x32xi32>
    %c0_i32 = arith.constant 0 : i32
    %c7_i32 = arith.constant 7 : i32
    %44 = vector.broadcast %c0_i32 : i32 to vector<2x32xi32>
    %45 = vector.broadcast %c7_i32 : i32 to vector<2x32xi32>
    %46 = arith.select %43, %44, %45 : vector<2x32xi1>, vector<2x32xi32>
    %47 = vector.broadcast %9 : vector<2x1xi32> to vector<2x32xi32>
    %48 = arith.cmpi slt, %46, %47 : vector<2x32xi32>
    %49 = arith.extui %48 : vector<2x32xi1> to vector<2x32xi32>
    %50 = arith.sitofp %49 : vector<2x32xi32> to vector<2x32xf32>
    %51 = arith.mulf %50, %41 : vector<2x32xf32>
    %cst_25 = arith.constant 1.000000e+00 : f32
    %52 = vector.broadcast %cst_25 : f32 to vector<2x32xf32>
    %53 = arith.subf %52, %50 : vector<2x32xf32>
    %54 = arith.mulf %53, %11 : vector<2x32xf32>
    %55 = arith.addf %51, %54 : vector<2x32xf32>
    %56 = arith.mulf %50, %39 : vector<2x32xf32>
    %cst_26 = arith.constant 1.000000e+00 : f32
    %57 = vector.broadcast %cst_26 : f32 to vector<2x32xf32>
    %58 = arith.subf %57, %50 : vector<2x32xf32>
    %59 = arith.mulf %58, %12 : vector<2x32xf32>
    %60 = arith.addf %56, %59 : vector<2x32xf32>
    %c0_27 = arith.constant 0 : index
    %c1 = arith.constant 1 : index
    %c0_28 = arith.constant 0 : index
    %c0_29 = arith.constant 0 : index
    %61 = vector.load %arg1[%c0_27, %c1, %c0_28, %c0_29] : memref<1x8x2x32xf32, #tpu.memory_space<vmem>>, vector<1x1x2x32xf32>
    %62 = vector.shape_cast %61 : vector<1x1x2x32xf32> to vector<2x32xf32>
    %c0_30 = arith.constant 0 : index
    %c6 = arith.constant 6 : index
    %c0_31 = arith.constant 0 : index
    %c0_32 = arith.constant 0 : index
    %63 = vector.load %arg1[%c0_30, %c6, %c0_31, %c0_32] : memref<1x8x2x32xf32, #tpu.memory_space<vmem>>, vector<1x1x2x32xf32>
    %64 = vector.shape_cast %63 : vector<1x1x2x32xf32> to vector<2x32xf32>
    %cst_33 = arith.constant dense<0.000000e+00> : vector<2x128xf32>
    %65 = tpu.matmul %62, %1, %cst_33 {dimension_numbers = #tpu.dot_dimension_numbers<[1], [0], [0], [1], [0, 0, 1, 1], [], []>} : vector<2x32xf32>, vector<32x128xf32>, vector<2x128xf32> -> vector<2x128xf32>
    %cst_34 = arith.constant dense<0.000000e+00> : vector<2x128xf32>
    %66 = tpu.matmul %64, %3, %cst_34 {dimension_numbers = #tpu.dot_dimension_numbers<[1], [0], [0], [1], [0, 0, 1, 1], [], []>} : vector<2x32xf32>, vector<32x128xf32>, vector<2x128xf32> -> vector<2x128xf32>
    %67 = arith.addf %65, %66 : vector<2x128xf32>
    %cst_35 = arith.constant dense<0.000000e+00> : vector<2x128xf32>
    %68 = tpu.matmul %55, %5, %cst_35 {dimension_numbers = #tpu.dot_dimension_numbers<[1], [0], [0], [1], [0, 0, 1, 1], [], []>} : vector<2x32xf32>, vector<32x128xf32>, vector<2x128xf32> -> vector<2x128xf32>
    %69 = arith.addf %67, %68 : vector<2x128xf32>
    %70 = vector.broadcast %7 : vector<1x128xf32> to vector<2x128xf32>
    %71 = arith.addf %69, %70 : vector<2x128xf32>
    %72 = vector.extract_strided_slice %71 {offsets = [0, 0], sizes = [2, 96], strides = [1, 1]} : vector<2x128xf32> to vector<2x96xf32>
    %cst_36 = arith.constant 5.000000e-01 : f32
    %73 = vector.broadcast %cst_36 : f32 to vector<2x96xf32>
    %74 = arith.mulf %73, %72 : vector<2x96xf32>
    %75 = math.tanh %74 : vector<2x96xf32>
    %cst_37 = arith.constant 5.000000e-01 : f32
    %76 = vector.broadcast %cst_37 : f32 to vector<2x96xf32>
    %77 = arith.mulf %76, %75 : vector<2x96xf32>
    %cst_38 = arith.constant 5.000000e-01 : f32
    %78 = vector.broadcast %cst_38 : f32 to vector<2x96xf32>
    %79 = arith.addf %77, %78 : vector<2x96xf32>
    %80 = vector.extract_strided_slice %79 {offsets = [0, 0], sizes = [2, 32], strides = [1, 1]} : vector<2x96xf32> to vector<2x32xf32>
    %81 = vector.extract_strided_slice %79 {offsets = [0, 32], sizes = [2, 32], strides = [1, 1]} : vector<2x96xf32> to vector<2x32xf32>
    %82 = vector.extract_strided_slice %79 {offsets = [0, 64], sizes = [2, 32], strides = [1, 1]} : vector<2x96xf32> to vector<2x32xf32>
    %83 = vector.extract_strided_slice %71 {offsets = [0, 96], sizes = [2, 32], strides = [1, 1]} : vector<2x128xf32> to vector<2x32xf32>
    %84 = math.tanh %83 : vector<2x32xf32>
    %85 = arith.mulf %81, %60 : vector<2x32xf32>
    %86 = arith.mulf %80, %84 : vector<2x32xf32>
    %87 = arith.addf %85, %86 : vector<2x32xf32>
    %88 = math.tanh %87 : vector<2x32xf32>
    %89 = arith.mulf %82, %88 : vector<2x32xf32>
    %c16_i32_39 = arith.constant 16 : i32
    %90 = vector.broadcast %c16_i32_39 : i32 to vector<2x32xi32>
    %91 = arith.cmpi slt, %10, %90 : vector<2x32xi32>
    %c1_i32 = arith.constant 1 : i32
    %c6_i32 = arith.constant 6 : i32
    %92 = vector.broadcast %c1_i32 : i32 to vector<2x32xi32>
    %93 = vector.broadcast %c6_i32 : i32 to vector<2x32xi32>
    %94 = arith.select %91, %92, %93 : vector<2x32xi1>, vector<2x32xi32>
    %95 = vector.broadcast %9 : vector<2x1xi32> to vector<2x32xi32>
    %96 = arith.cmpi slt, %94, %95 : vector<2x32xi32>
    %97 = arith.extui %96 : vector<2x32xi1> to vector<2x32xi32>
    %98 = arith.sitofp %97 : vector<2x32xi32> to vector<2x32xf32>
    %99 = arith.mulf %98, %89 : vector<2x32xf32>
    %cst_40 = arith.constant 1.000000e+00 : f32
    %100 = vector.broadcast %cst_40 : f32 to vector<2x32xf32>
    %101 = arith.subf %100, %98 : vector<2x32xf32>
    %102 = arith.mulf %101, %55 : vector<2x32xf32>
    %103 = arith.addf %99, %102 : vector<2x32xf32>
    %104 = arith.mulf %98, %87 : vector<2x32xf32>
    %cst_41 = arith.constant 1.000000e+00 : f32
    %105 = vector.broadcast %cst_41 : f32 to vector<2x32xf32>
    %106 = arith.subf %105, %98 : vector<2x32xf32>
    %107 = arith.mulf %106, %60 : vector<2x32xf32>
    %108 = arith.addf %104, %107 : vector<2x32xf32>
    %c0_42 = arith.constant 0 : index
    %c2 = arith.constant 2 : index
    %c0_43 = arith.constant 0 : index
    %c0_44 = arith.constant 0 : index
    %109 = vector.load %arg1[%c0_42, %c2, %c0_43, %c0_44] : memref<1x8x2x32xf32, #tpu.memory_space<vmem>>, vector<1x1x2x32xf32>
    %110 = vector.shape_cast %109 : vector<1x1x2x32xf32> to vector<2x32xf32>
    %c0_45 = arith.constant 0 : index
    %c5 = arith.constant 5 : index
    %c0_46 = arith.constant 0 : index
    %c0_47 = arith.constant 0 : index
    %111 = vector.load %arg1[%c0_45, %c5, %c0_46, %c0_47] : memref<1x8x2x32xf32, #tpu.memory_space<vmem>>, vector<1x1x2x32xf32>
    %112 = vector.shape_cast %111 : vector<1x1x2x32xf32> to vector<2x32xf32>
    %cst_48 = arith.constant dense<0.000000e+00> : vector<2x128xf32>
    %113 = tpu.matmul %110, %1, %cst_48 {dimension_numbers = #tpu.dot_dimension_numbers<[1], [0], [0], [1], [0, 0, 1, 1], [], []>} : vector<2x32xf32>, vector<32x128xf32>, vector<2x128xf32> -> vector<2x128xf32>
    %cst_49 = arith.constant dense<0.000000e+00> : vector<2x128xf32>
    %114 = tpu.matmul %112, %3, %cst_49 {dimension_numbers = #tpu.dot_dimension_numbers<[1], [0], [0], [1], [0, 0, 1, 1], [], []>} : vector<2x32xf32>, vector<32x128xf32>, vector<2x128xf32> -> vector<2x128xf32>
    %115 = arith.addf %113, %114 : vector<2x128xf32>
    %cst_50 = arith.constant dense<0.000000e+00> : vector<2x128xf32>
    %116 = tpu.matmul %103, %5, %cst_50 {dimension_numbers = #tpu.dot_dimension_numbers<[1], [0], [0], [1], [0, 0, 1, 1], [], []>} : vector<2x32xf32>, vector<32x128xf32>, vector<2x128xf32> -> vector<2x128xf32>
    %117 = arith.addf %115, %116 : vector<2x128xf32>
    %118 = vector.broadcast %7 : vector<1x128xf32> to vector<2x128xf32>
    %119 = arith.addf %117, %118 : vector<2x128xf32>
    %120 = vector.extract_strided_slice %119 {offsets = [0, 0], sizes = [2, 96], strides = [1, 1]} : vector<2x128xf32> to vector<2x96xf32>
    %cst_51 = arith.constant 5.000000e-01 : f32
    %121 = vector.broadcast %cst_51 : f32 to vector<2x96xf32>
    %122 = arith.mulf %121, %120 : vector<2x96xf32>
    %123 = math.tanh %122 : vector<2x96xf32>
    %cst_52 = arith.constant 5.000000e-01 : f32
    %124 = vector.broadcast %cst_52 : f32 to vector<2x96xf32>
    %125 = arith.mulf %124, %123 : vector<2x96xf32>
    %cst_53 = arith.constant 5.000000e-01 : f32
    %126 = vector.broadcast %cst_53 : f32 to vector<2x96xf32>
    %127 = arith.addf %125, %126 : vector<2x96xf32>
    %128 = vector.extract_strided_slice %127 {offsets = [0, 0], sizes = [2, 32], strides = [1, 1]} : vector<2x96xf32> to vector<2x32xf32>
    %129 = vector.extract_strided_slice %127 {offsets = [0, 32], sizes = [2, 32], strides = [1, 1]} : vector<2x96xf32> to vector<2x32xf32>
    %130 = vector.extract_strided_slice %127 {offsets = [0, 64], sizes = [2, 32], strides = [1, 1]} : vector<2x96xf32> to vector<2x32xf32>
    %131 = vector.extract_strided_slice %119 {offsets = [0, 96], sizes = [2, 32], strides = [1, 1]} : vector<2x128xf32> to vector<2x32xf32>
    %132 = math.tanh %131 : vector<2x32xf32>
    %133 = arith.mulf %129, %108 : vector<2x32xf32>
    %134 = arith.mulf %128, %132 : vector<2x32xf32>
    %135 = arith.addf %133, %134 : vector<2x32xf32>
    %136 = math.tanh %135 : vector<2x32xf32>
    %137 = arith.mulf %130, %136 : vector<2x32xf32>
    %c16_i32_54 = arith.constant 16 : i32
    %138 = vector.broadcast %c16_i32_54 : i32 to vector<2x32xi32>
    %139 = arith.cmpi slt, %10, %138 : vector<2x32xi32>
    %c2_i32 = arith.constant 2 : i32
    %c5_i32 = arith.constant 5 : i32
    %140 = vector.broadcast %c2_i32 : i32 to vector<2x32xi32>
    %141 = vector.broadcast %c5_i32 : i32 to vector<2x32xi32>
    %142 = arith.select %139, %140, %141 : vector<2x32xi1>, vector<2x32xi32>
    %143 = vector.broadcast %9 : vector<2x1xi32> to vector<2x32xi32>
    %144 = arith.cmpi slt, %142, %143 : vector<2x32xi32>
    %145 = arith.extui %144 : vector<2x32xi1> to vector<2x32xi32>
    %146 = arith.sitofp %145 : vector<2x32xi32> to vector<2x32xf32>
    %147 = arith.mulf %146, %137 : vector<2x32xf32>
    %cst_55 = arith.constant 1.000000e+00 : f32
    %148 = vector.broadcast %cst_55 : f32 to vector<2x32xf32>
    %149 = arith.subf %148, %146 : vector<2x32xf32>
    %150 = arith.mulf %149, %103 : vector<2x32xf32>
    %151 = arith.addf %147, %150 : vector<2x32xf32>
    %152 = arith.mulf %146, %135 : vector<2x32xf32>
    %cst_56 = arith.constant 1.000000e+00 : f32
    %153 = vector.broadcast %cst_56 : f32 to vector<2x32xf32>
    %154 = arith.subf %153, %146 : vector<2x32xf32>
    %155 = arith.mulf %154, %108 : vector<2x32xf32>
    %156 = arith.addf %152, %155 : vector<2x32xf32>
    %c0_57 = arith.constant 0 : index
    %c3 = arith.constant 3 : index
    %c0_58 = arith.constant 0 : index
    %c0_59 = arith.constant 0 : index
    %157 = vector.load %arg1[%c0_57, %c3, %c0_58, %c0_59] : memref<1x8x2x32xf32, #tpu.memory_space<vmem>>, vector<1x1x2x32xf32>
    %158 = vector.shape_cast %157 : vector<1x1x2x32xf32> to vector<2x32xf32>
    %c0_60 = arith.constant 0 : index
    %c4 = arith.constant 4 : index
    %c0_61 = arith.constant 0 : index
    %c0_62 = arith.constant 0 : index
    %159 = vector.load %arg1[%c0_60, %c4, %c0_61, %c0_62] : memref<1x8x2x32xf32, #tpu.memory_space<vmem>>, vector<1x1x2x32xf32>
    %160 = vector.shape_cast %159 : vector<1x1x2x32xf32> to vector<2x32xf32>
    %cst_63 = arith.constant dense<0.000000e+00> : vector<2x128xf32>
    %161 = tpu.matmul %158, %1, %cst_63 {dimension_numbers = #tpu.dot_dimension_numbers<[1], [0], [0], [1], [0, 0, 1, 1], [], []>} : vector<2x32xf32>, vector<32x128xf32>, vector<2x128xf32> -> vector<2x128xf32>
    %cst_64 = arith.constant dense<0.000000e+00> : vector<2x128xf32>
    %162 = tpu.matmul %160, %3, %cst_64 {dimension_numbers = #tpu.dot_dimension_numbers<[1], [0], [0], [1], [0, 0, 1, 1], [], []>} : vector<2x32xf32>, vector<32x128xf32>, vector<2x128xf32> -> vector<2x128xf32>
    %163 = arith.addf %161, %162 : vector<2x128xf32>
    %cst_65 = arith.constant dense<0.000000e+00> : vector<2x128xf32>
    %164 = tpu.matmul %151, %5, %cst_65 {dimension_numbers = #tpu.dot_dimension_numbers<[1], [0], [0], [1], [0, 0, 1, 1], [], []>} : vector<2x32xf32>, vector<32x128xf32>, vector<2x128xf32> -> vector<2x128xf32>
    %165 = arith.addf %163, %164 : vector<2x128xf32>
    %166 = vector.broadcast %7 : vector<1x128xf32> to vector<2x128xf32>
    %167 = arith.addf %165, %166 : vector<2x128xf32>
    %168 = vector.extract_strided_slice %167 {offsets = [0, 0], sizes = [2, 96], strides = [1, 1]} : vector<2x128xf32> to vector<2x96xf32>
    %cst_66 = arith.constant 5.000000e-01 : f32
    %169 = vector.broadcast %cst_66 : f32 to vector<2x96xf32>
    %170 = arith.mulf %169, %168 : vector<2x96xf32>
    %171 = math.tanh %170 : vector<2x96xf32>
    %cst_67 = arith.constant 5.000000e-01 : f32
    %172 = vector.broadcast %cst_67 : f32 to vector<2x96xf32>
    %173 = arith.mulf %172, %171 : vector<2x96xf32>
    %cst_68 = arith.constant 5.000000e-01 : f32
    %174 = vector.broadcast %cst_68 : f32 to vector<2x96xf32>
    %175 = arith.addf %173, %174 : vector<2x96xf32>
    %176 = vector.extract_strided_slice %175 {offsets = [0, 0], sizes = [2, 32], strides = [1, 1]} : vector<2x96xf32> to vector<2x32xf32>
    %177 = vector.extract_strided_slice %175 {offsets = [0, 32], sizes = [2, 32], strides = [1, 1]} : vector<2x96xf32> to vector<2x32xf32>
    %178 = vector.extract_strided_slice %175 {offsets = [0, 64], sizes = [2, 32], strides = [1, 1]} : vector<2x96xf32> to vector<2x32xf32>
    %179 = vector.extract_strided_slice %167 {offsets = [0, 96], sizes = [2, 32], strides = [1, 1]} : vector<2x128xf32> to vector<2x32xf32>
    %180 = math.tanh %179 : vector<2x32xf32>
    %181 = arith.mulf %177, %156 : vector<2x32xf32>
    %182 = arith.mulf %176, %180 : vector<2x32xf32>
    %183 = arith.addf %181, %182 : vector<2x32xf32>
    %184 = math.tanh %183 : vector<2x32xf32>
    %185 = arith.mulf %178, %184 : vector<2x32xf32>
    %c16_i32_69 = arith.constant 16 : i32
    %186 = vector.broadcast %c16_i32_69 : i32 to vector<2x32xi32>
    %187 = arith.cmpi slt, %10, %186 : vector<2x32xi32>
    %c3_i32 = arith.constant 3 : i32
    %c4_i32 = arith.constant 4 : i32
    %188 = vector.broadcast %c3_i32 : i32 to vector<2x32xi32>
    %189 = vector.broadcast %c4_i32 : i32 to vector<2x32xi32>
    %190 = arith.select %187, %188, %189 : vector<2x32xi1>, vector<2x32xi32>
    %191 = vector.broadcast %9 : vector<2x1xi32> to vector<2x32xi32>
    %192 = arith.cmpi slt, %190, %191 : vector<2x32xi32>
    %193 = arith.extui %192 : vector<2x32xi1> to vector<2x32xi32>
    %194 = arith.sitofp %193 : vector<2x32xi32> to vector<2x32xf32>
    %195 = arith.mulf %194, %185 : vector<2x32xf32>
    %cst_70 = arith.constant 1.000000e+00 : f32
    %196 = vector.broadcast %cst_70 : f32 to vector<2x32xf32>
    %197 = arith.subf %196, %194 : vector<2x32xf32>
    %198 = arith.mulf %197, %151 : vector<2x32xf32>
    %199 = arith.addf %195, %198 : vector<2x32xf32>
    %200 = arith.mulf %194, %183 : vector<2x32xf32>
    %cst_71 = arith.constant 1.000000e+00 : f32
    %201 = vector.broadcast %cst_71 : f32 to vector<2x32xf32>
    %202 = arith.subf %201, %194 : vector<2x32xf32>
    %203 = arith.mulf %202, %156 : vector<2x32xf32>
    %204 = arith.addf %200, %203 : vector<2x32xf32>
    %c0_72 = arith.constant 0 : index
    %c4_73 = arith.constant 4 : index
    %c0_74 = arith.constant 0 : index
    %c0_75 = arith.constant 0 : index
    %205 = vector.load %arg1[%c0_72, %c4_73, %c0_74, %c0_75] : memref<1x8x2x32xf32, #tpu.memory_space<vmem>>, vector<1x1x2x32xf32>
    %206 = vector.shape_cast %205 : vector<1x1x2x32xf32> to vector<2x32xf32>
    %c0_76 = arith.constant 0 : index
    %c3_77 = arith.constant 3 : index
    %c0_78 = arith.constant 0 : index
    %c0_79 = arith.constant 0 : index
    %207 = vector.load %arg1[%c0_76, %c3_77, %c0_78, %c0_79] : memref<1x8x2x32xf32, #tpu.memory_space<vmem>>, vector<1x1x2x32xf32>
    %208 = vector.shape_cast %207 : vector<1x1x2x32xf32> to vector<2x32xf32>
    %cst_80 = arith.constant dense<0.000000e+00> : vector<2x128xf32>
    %209 = tpu.matmul %206, %1, %cst_80 {dimension_numbers = #tpu.dot_dimension_numbers<[1], [0], [0], [1], [0, 0, 1, 1], [], []>} : vector<2x32xf32>, vector<32x128xf32>, vector<2x128xf32> -> vector<2x128xf32>
    %cst_81 = arith.constant dense<0.000000e+00> : vector<2x128xf32>
    %210 = tpu.matmul %208, %3, %cst_81 {dimension_numbers = #tpu.dot_dimension_numbers<[1], [0], [0], [1], [0, 0, 1, 1], [], []>} : vector<2x32xf32>, vector<32x128xf32>, vector<2x128xf32> -> vector<2x128xf32>
    %211 = arith.addf %209, %210 : vector<2x128xf32>
    %cst_82 = arith.constant dense<0.000000e+00> : vector<2x128xf32>
    %212 = tpu.matmul %199, %5, %cst_82 {dimension_numbers = #tpu.dot_dimension_numbers<[1], [0], [0], [1], [0, 0, 1, 1], [], []>} : vector<2x32xf32>, vector<32x128xf32>, vector<2x128xf32> -> vector<2x128xf32>
    %213 = arith.addf %211, %212 : vector<2x128xf32>
    %214 = vector.broadcast %7 : vector<1x128xf32> to vector<2x128xf32>
    %215 = arith.addf %213, %214 : vector<2x128xf32>
    %216 = vector.extract_strided_slice %215 {offsets = [0, 0], sizes = [2, 96], strides = [1, 1]} : vector<2x128xf32> to vector<2x96xf32>
    %cst_83 = arith.constant 5.000000e-01 : f32
    %217 = vector.broadcast %cst_83 : f32 to vector<2x96xf32>
    %218 = arith.mulf %217, %216 : vector<2x96xf32>
    %219 = math.tanh %218 : vector<2x96xf32>
    %cst_84 = arith.constant 5.000000e-01 : f32
    %220 = vector.broadcast %cst_84 : f32 to vector<2x96xf32>
    %221 = arith.mulf %220, %219 : vector<2x96xf32>
    %cst_85 = arith.constant 5.000000e-01 : f32
    %222 = vector.broadcast %cst_85 : f32 to vector<2x96xf32>
    %223 = arith.addf %221, %222 : vector<2x96xf32>
    %224 = vector.extract_strided_slice %223 {offsets = [0, 0], sizes = [2, 32], strides = [1, 1]} : vector<2x96xf32> to vector<2x32xf32>
    %225 = vector.extract_strided_slice %223 {offsets = [0, 32], sizes = [2, 32], strides = [1, 1]} : vector<2x96xf32> to vector<2x32xf32>
    %226 = vector.extract_strided_slice %223 {offsets = [0, 64], sizes = [2, 32], strides = [1, 1]} : vector<2x96xf32> to vector<2x32xf32>
    %227 = vector.extract_strided_slice %215 {offsets = [0, 96], sizes = [2, 32], strides = [1, 1]} : vector<2x128xf32> to vector<2x32xf32>
    %228 = math.tanh %227 : vector<2x32xf32>
    %229 = arith.mulf %225, %204 : vector<2x32xf32>
    %230 = arith.mulf %224, %228 : vector<2x32xf32>
    %231 = arith.addf %229, %230 : vector<2x32xf32>
    %232 = math.tanh %231 : vector<2x32xf32>
    %233 = arith.mulf %226, %232 : vector<2x32xf32>
    %c16_i32_86 = arith.constant 16 : i32
    %234 = vector.broadcast %c16_i32_86 : i32 to vector<2x32xi32>
    %235 = arith.cmpi slt, %10, %234 : vector<2x32xi32>
    %c4_i32_87 = arith.constant 4 : i32
    %c3_i32_88 = arith.constant 3 : i32
    %236 = vector.broadcast %c4_i32_87 : i32 to vector<2x32xi32>
    %237 = vector.broadcast %c3_i32_88 : i32 to vector<2x32xi32>
    %238 = arith.select %235, %236, %237 : vector<2x32xi1>, vector<2x32xi32>
    %239 = vector.broadcast %9 : vector<2x1xi32> to vector<2x32xi32>
    %240 = arith.cmpi slt, %238, %239 : vector<2x32xi32>
    %241 = arith.extui %240 : vector<2x32xi1> to vector<2x32xi32>
    %242 = arith.sitofp %241 : vector<2x32xi32> to vector<2x32xf32>
    %243 = arith.mulf %242, %233 : vector<2x32xf32>
    %cst_89 = arith.constant 1.000000e+00 : f32
    %244 = vector.broadcast %cst_89 : f32 to vector<2x32xf32>
    %245 = arith.subf %244, %242 : vector<2x32xf32>
    %246 = arith.mulf %245, %199 : vector<2x32xf32>
    %247 = arith.addf %243, %246 : vector<2x32xf32>
    %248 = arith.mulf %242, %231 : vector<2x32xf32>
    %cst_90 = arith.constant 1.000000e+00 : f32
    %249 = vector.broadcast %cst_90 : f32 to vector<2x32xf32>
    %250 = arith.subf %249, %242 : vector<2x32xf32>
    %251 = arith.mulf %250, %204 : vector<2x32xf32>
    %252 = arith.addf %248, %251 : vector<2x32xf32>
    %c0_91 = arith.constant 0 : index
    %c5_92 = arith.constant 5 : index
    %c0_93 = arith.constant 0 : index
    %c0_94 = arith.constant 0 : index
    %253 = vector.load %arg1[%c0_91, %c5_92, %c0_93, %c0_94] : memref<1x8x2x32xf32, #tpu.memory_space<vmem>>, vector<1x1x2x32xf32>
    %254 = vector.shape_cast %253 : vector<1x1x2x32xf32> to vector<2x32xf32>
    %c0_95 = arith.constant 0 : index
    %c2_96 = arith.constant 2 : index
    %c0_97 = arith.constant 0 : index
    %c0_98 = arith.constant 0 : index
    %255 = vector.load %arg1[%c0_95, %c2_96, %c0_97, %c0_98] : memref<1x8x2x32xf32, #tpu.memory_space<vmem>>, vector<1x1x2x32xf32>
    %256 = vector.shape_cast %255 : vector<1x1x2x32xf32> to vector<2x32xf32>
    %cst_99 = arith.constant dense<0.000000e+00> : vector<2x128xf32>
    %257 = tpu.matmul %254, %1, %cst_99 {dimension_numbers = #tpu.dot_dimension_numbers<[1], [0], [0], [1], [0, 0, 1, 1], [], []>} : vector<2x32xf32>, vector<32x128xf32>, vector<2x128xf32> -> vector<2x128xf32>
    %cst_100 = arith.constant dense<0.000000e+00> : vector<2x128xf32>
    %258 = tpu.matmul %256, %3, %cst_100 {dimension_numbers = #tpu.dot_dimension_numbers<[1], [0], [0], [1], [0, 0, 1, 1], [], []>} : vector<2x32xf32>, vector<32x128xf32>, vector<2x128xf32> -> vector<2x128xf32>
    %259 = arith.addf %257, %258 : vector<2x128xf32>
    %cst_101 = arith.constant dense<0.000000e+00> : vector<2x128xf32>
    %260 = tpu.matmul %247, %5, %cst_101 {dimension_numbers = #tpu.dot_dimension_numbers<[1], [0], [0], [1], [0, 0, 1, 1], [], []>} : vector<2x32xf32>, vector<32x128xf32>, vector<2x128xf32> -> vector<2x128xf32>
    %261 = arith.addf %259, %260 : vector<2x128xf32>
    %262 = vector.broadcast %7 : vector<1x128xf32> to vector<2x128xf32>
    %263 = arith.addf %261, %262 : vector<2x128xf32>
    %264 = vector.extract_strided_slice %263 {offsets = [0, 0], sizes = [2, 96], strides = [1, 1]} : vector<2x128xf32> to vector<2x96xf32>
    %cst_102 = arith.constant 5.000000e-01 : f32
    %265 = vector.broadcast %cst_102 : f32 to vector<2x96xf32>
    %266 = arith.mulf %265, %264 : vector<2x96xf32>
    %267 = math.tanh %266 : vector<2x96xf32>
    %cst_103 = arith.constant 5.000000e-01 : f32
    %268 = vector.broadcast %cst_103 : f32 to vector<2x96xf32>
    %269 = arith.mulf %268, %267 : vector<2x96xf32>
    %cst_104 = arith.constant 5.000000e-01 : f32
    %270 = vector.broadcast %cst_104 : f32 to vector<2x96xf32>
    %271 = arith.addf %269, %270 : vector<2x96xf32>
    %272 = vector.extract_strided_slice %271 {offsets = [0, 0], sizes = [2, 32], strides = [1, 1]} : vector<2x96xf32> to vector<2x32xf32>
    %273 = vector.extract_strided_slice %271 {offsets = [0, 32], sizes = [2, 32], strides = [1, 1]} : vector<2x96xf32> to vector<2x32xf32>
    %274 = vector.extract_strided_slice %271 {offsets = [0, 64], sizes = [2, 32], strides = [1, 1]} : vector<2x96xf32> to vector<2x32xf32>
    %275 = vector.extract_strided_slice %263 {offsets = [0, 96], sizes = [2, 32], strides = [1, 1]} : vector<2x128xf32> to vector<2x32xf32>
    %276 = math.tanh %275 : vector<2x32xf32>
    %277 = arith.mulf %273, %252 : vector<2x32xf32>
    %278 = arith.mulf %272, %276 : vector<2x32xf32>
    %279 = arith.addf %277, %278 : vector<2x32xf32>
    %280 = math.tanh %279 : vector<2x32xf32>
    %281 = arith.mulf %274, %280 : vector<2x32xf32>
    %c16_i32_105 = arith.constant 16 : i32
    %282 = vector.broadcast %c16_i32_105 : i32 to vector<2x32xi32>
    %283 = arith.cmpi slt, %10, %282 : vector<2x32xi32>
    %c5_i32_106 = arith.constant 5 : i32
    %c2_i32_107 = arith.constant 2 : i32
    %284 = vector.broadcast %c5_i32_106 : i32 to vector<2x32xi32>
    %285 = vector.broadcast %c2_i32_107 : i32 to vector<2x32xi32>
    %286 = arith.select %283, %284, %285 : vector<2x32xi1>, vector<2x32xi32>
    %287 = vector.broadcast %9 : vector<2x1xi32> to vector<2x32xi32>
    %288 = arith.cmpi slt, %286, %287 : vector<2x32xi32>
    %289 = arith.extui %288 : vector<2x32xi1> to vector<2x32xi32>
    %290 = arith.sitofp %289 : vector<2x32xi32> to vector<2x32xf32>
    %291 = arith.mulf %290, %281 : vector<2x32xf32>
    %cst_108 = arith.constant 1.000000e+00 : f32
    %292 = vector.broadcast %cst_108 : f32 to vector<2x32xf32>
    %293 = arith.subf %292, %290 : vector<2x32xf32>
    %294 = arith.mulf %293, %247 : vector<2x32xf32>
    %295 = arith.addf %291, %294 : vector<2x32xf32>
    %296 = arith.mulf %290, %279 : vector<2x32xf32>
    %cst_109 = arith.constant 1.000000e+00 : f32
    %297 = vector.broadcast %cst_109 : f32 to vector<2x32xf32>
    %298 = arith.subf %297, %290 : vector<2x32xf32>
    %299 = arith.mulf %298, %252 : vector<2x32xf32>
    %300 = arith.addf %296, %299 : vector<2x32xf32>
    %c0_110 = arith.constant 0 : index
    %c6_111 = arith.constant 6 : index
    %c0_112 = arith.constant 0 : index
    %c0_113 = arith.constant 0 : index
    %301 = vector.load %arg1[%c0_110, %c6_111, %c0_112, %c0_113] : memref<1x8x2x32xf32, #tpu.memory_space<vmem>>, vector<1x1x2x32xf32>
    %302 = vector.shape_cast %301 : vector<1x1x2x32xf32> to vector<2x32xf32>
    %c0_114 = arith.constant 0 : index
    %c1_115 = arith.constant 1 : index
    %c0_116 = arith.constant 0 : index
    %c0_117 = arith.constant 0 : index
    %303 = vector.load %arg1[%c0_114, %c1_115, %c0_116, %c0_117] : memref<1x8x2x32xf32, #tpu.memory_space<vmem>>, vector<1x1x2x32xf32>
    %304 = vector.shape_cast %303 : vector<1x1x2x32xf32> to vector<2x32xf32>
    %cst_118 = arith.constant dense<0.000000e+00> : vector<2x128xf32>
    %305 = tpu.matmul %302, %1, %cst_118 {dimension_numbers = #tpu.dot_dimension_numbers<[1], [0], [0], [1], [0, 0, 1, 1], [], []>} : vector<2x32xf32>, vector<32x128xf32>, vector<2x128xf32> -> vector<2x128xf32>
    %cst_119 = arith.constant dense<0.000000e+00> : vector<2x128xf32>
    %306 = tpu.matmul %304, %3, %cst_119 {dimension_numbers = #tpu.dot_dimension_numbers<[1], [0], [0], [1], [0, 0, 1, 1], [], []>} : vector<2x32xf32>, vector<32x128xf32>, vector<2x128xf32> -> vector<2x128xf32>
    %307 = arith.addf %305, %306 : vector<2x128xf32>
    %cst_120 = arith.constant dense<0.000000e+00> : vector<2x128xf32>
    %308 = tpu.matmul %295, %5, %cst_120 {dimension_numbers = #tpu.dot_dimension_numbers<[1], [0], [0], [1], [0, 0, 1, 1], [], []>} : vector<2x32xf32>, vector<32x128xf32>, vector<2x128xf32> -> vector<2x128xf32>
    %309 = arith.addf %307, %308 : vector<2x128xf32>
    %310 = vector.broadcast %7 : vector<1x128xf32> to vector<2x128xf32>
    %311 = arith.addf %309, %310 : vector<2x128xf32>
    %312 = vector.extract_strided_slice %311 {offsets = [0, 0], sizes = [2, 96], strides = [1, 1]} : vector<2x128xf32> to vector<2x96xf32>
    %cst_121 = arith.constant 5.000000e-01 : f32
    %313 = vector.broadcast %cst_121 : f32 to vector<2x96xf32>
    %314 = arith.mulf %313, %312 : vector<2x96xf32>
    %315 = math.tanh %314 : vector<2x96xf32>
    %cst_122 = arith.constant 5.000000e-01 : f32
    %316 = vector.broadcast %cst_122 : f32 to vector<2x96xf32>
    %317 = arith.mulf %316, %315 : vector<2x96xf32>
    %cst_123 = arith.constant 5.000000e-01 : f32
    %318 = vector.broadcast %cst_123 : f32 to vector<2x96xf32>
    %319 = arith.addf %317, %318 : vector<2x96xf32>
    %320 = vector.extract_strided_slice %319 {offsets = [0, 0], sizes = [2, 32], strides = [1, 1]} : vector<2x96xf32> to vector<2x32xf32>
    %321 = vector.extract_strided_slice %319 {offsets = [0, 32], sizes = [2, 32], strides = [1, 1]} : vector<2x96xf32> to vector<2x32xf32>
    %322 = vector.extract_strided_slice %319 {offsets = [0, 64], sizes = [2, 32], strides = [1, 1]} : vector<2x96xf32> to vector<2x32xf32>
    %323 = vector.extract_strided_slice %311 {offsets = [0, 96], sizes = [2, 32], strides = [1, 1]} : vector<2x128xf32> to vector<2x32xf32>
    %324 = math.tanh %323 : vector<2x32xf32>
    %325 = arith.mulf %321, %300 : vector<2x32xf32>
    %326 = arith.mulf %320, %324 : vector<2x32xf32>
    %327 = arith.addf %325, %326 : vector<2x32xf32>
    %328 = math.tanh %327 : vector<2x32xf32>
    %329 = arith.mulf %322, %328 : vector<2x32xf32>
    %c16_i32_124 = arith.constant 16 : i32
    %330 = vector.broadcast %c16_i32_124 : i32 to vector<2x32xi32>
    %331 = arith.cmpi slt, %10, %330 : vector<2x32xi32>
    %c6_i32_125 = arith.constant 6 : i32
    %c1_i32_126 = arith.constant 1 : i32
    %332 = vector.broadcast %c6_i32_125 : i32 to vector<2x32xi32>
    %333 = vector.broadcast %c1_i32_126 : i32 to vector<2x32xi32>
    %334 = arith.select %331, %332, %333 : vector<2x32xi1>, vector<2x32xi32>
    %335 = vector.broadcast %9 : vector<2x1xi32> to vector<2x32xi32>
    %336 = arith.cmpi slt, %334, %335 : vector<2x32xi32>
    %337 = arith.extui %336 : vector<2x32xi1> to vector<2x32xi32>
    %338 = arith.sitofp %337 : vector<2x32xi32> to vector<2x32xf32>
    %339 = arith.mulf %338, %329 : vector<2x32xf32>
    %cst_127 = arith.constant 1.000000e+00 : f32
    %340 = vector.broadcast %cst_127 : f32 to vector<2x32xf32>
    %341 = arith.subf %340, %338 : vector<2x32xf32>
    %342 = arith.mulf %341, %295 : vector<2x32xf32>
    %343 = arith.addf %339, %342 : vector<2x32xf32>
    %344 = arith.mulf %338, %327 : vector<2x32xf32>
    %cst_128 = arith.constant 1.000000e+00 : f32
    %345 = vector.broadcast %cst_128 : f32 to vector<2x32xf32>
    %346 = arith.subf %345, %338 : vector<2x32xf32>
    %347 = arith.mulf %346, %300 : vector<2x32xf32>
    %348 = arith.addf %344, %347 : vector<2x32xf32>
    %c0_129 = arith.constant 0 : index
    %c7_130 = arith.constant 7 : index
    %c0_131 = arith.constant 0 : index
    %c0_132 = arith.constant 0 : index
    %349 = vector.load %arg1[%c0_129, %c7_130, %c0_131, %c0_132] : memref<1x8x2x32xf32, #tpu.memory_space<vmem>>, vector<1x1x2x32xf32>
    %350 = vector.shape_cast %349 : vector<1x1x2x32xf32> to vector<2x32xf32>
    %c0_133 = arith.constant 0 : index
    %c0_134 = arith.constant 0 : index
    %c0_135 = arith.constant 0 : index
    %c0_136 = arith.constant 0 : index
    %351 = vector.load %arg1[%c0_133, %c0_134, %c0_135, %c0_136] : memref<1x8x2x32xf32, #tpu.memory_space<vmem>>, vector<1x1x2x32xf32>
    %352 = vector.shape_cast %351 : vector<1x1x2x32xf32> to vector<2x32xf32>
    %cst_137 = arith.constant dense<0.000000e+00> : vector<2x128xf32>
    %353 = tpu.matmul %350, %1, %cst_137 {dimension_numbers = #tpu.dot_dimension_numbers<[1], [0], [0], [1], [0, 0, 1, 1], [], []>} : vector<2x32xf32>, vector<32x128xf32>, vector<2x128xf32> -> vector<2x128xf32>
    %cst_138 = arith.constant dense<0.000000e+00> : vector<2x128xf32>
    %354 = tpu.matmul %352, %3, %cst_138 {dimension_numbers = #tpu.dot_dimension_numbers<[1], [0], [0], [1], [0, 0, 1, 1], [], []>} : vector<2x32xf32>, vector<32x128xf32>, vector<2x128xf32> -> vector<2x128xf32>
    %355 = arith.addf %353, %354 : vector<2x128xf32>
    %cst_139 = arith.constant dense<0.000000e+00> : vector<2x128xf32>
    %356 = tpu.matmul %343, %5, %cst_139 {dimension_numbers = #tpu.dot_dimension_numbers<[1], [0], [0], [1], [0, 0, 1, 1], [], []>} : vector<2x32xf32>, vector<32x128xf32>, vector<2x128xf32> -> vector<2x128xf32>
    %357 = arith.addf %355, %356 : vector<2x128xf32>
    %358 = vector.broadcast %7 : vector<1x128xf32> to vector<2x128xf32>
    %359 = arith.addf %357, %358 : vector<2x128xf32>
    %360 = vector.extract_strided_slice %359 {offsets = [0, 0], sizes = [2, 96], strides = [1, 1]} : vector<2x128xf32> to vector<2x96xf32>
    %cst_140 = arith.constant 5.000000e-01 : f32
    %361 = vector.broadcast %cst_140 : f32 to vector<2x96xf32>
    %362 = arith.mulf %361, %360 : vector<2x96xf32>
    %363 = math.tanh %362 : vector<2x96xf32>
    %cst_141 = arith.constant 5.000000e-01 : f32
    %364 = vector.broadcast %cst_141 : f32 to vector<2x96xf32>
    %365 = arith.mulf %364, %363 : vector<2x96xf32>
    %cst_142 = arith.constant 5.000000e-01 : f32
    %366 = vector.broadcast %cst_142 : f32 to vector<2x96xf32>
    %367 = arith.addf %365, %366 : vector<2x96xf32>
    %368 = vector.extract_strided_slice %367 {offsets = [0, 0], sizes = [2, 32], strides = [1, 1]} : vector<2x96xf32> to vector<2x32xf32>
    %369 = vector.extract_strided_slice %367 {offsets = [0, 32], sizes = [2, 32], strides = [1, 1]} : vector<2x96xf32> to vector<2x32xf32>
    %370 = vector.extract_strided_slice %367 {offsets = [0, 64], sizes = [2, 32], strides = [1, 1]} : vector<2x96xf32> to vector<2x32xf32>
    %371 = vector.extract_strided_slice %359 {offsets = [0, 96], sizes = [2, 32], strides = [1, 1]} : vector<2x128xf32> to vector<2x32xf32>
    %372 = math.tanh %371 : vector<2x32xf32>
    %373 = arith.mulf %369, %348 : vector<2x32xf32>
    %374 = arith.mulf %368, %372 : vector<2x32xf32>
    %375 = arith.addf %373, %374 : vector<2x32xf32>
    %376 = math.tanh %375 : vector<2x32xf32>
    %377 = arith.mulf %370, %376 : vector<2x32xf32>
    %c16_i32_143 = arith.constant 16 : i32
    %378 = vector.broadcast %c16_i32_143 : i32 to vector<2x32xi32>
    %379 = arith.cmpi slt, %10, %378 : vector<2x32xi32>
    %c7_i32_144 = arith.constant 7 : i32
    %c0_i32_145 = arith.constant 0 : i32
    %380 = vector.broadcast %c7_i32_144 : i32 to vector<2x32xi32>
    %381 = vector.broadcast %c0_i32_145 : i32 to vector<2x32xi32>
    %382 = arith.select %379, %380, %381 : vector<2x32xi1>, vector<2x32xi32>
    %383 = vector.broadcast %9 : vector<2x1xi32> to vector<2x32xi32>
    %384 = arith.cmpi slt, %382, %383 : vector<2x32xi32>
    %385 = arith.extui %384 : vector<2x32xi1> to vector<2x32xi32>
    %386 = arith.sitofp %385 : vector<2x32xi32> to vector<2x32xf32>
    %387 = arith.mulf %386, %377 : vector<2x32xf32>
    %cst_146 = arith.constant 1.000000e+00 : f32
    %388 = vector.broadcast %cst_146 : f32 to vector<2x32xf32>
    %389 = arith.subf %388, %386 : vector<2x32xf32>
    %390 = arith.mulf %389, %343 : vector<2x32xf32>
    %391 = arith.addf %387, %390 : vector<2x32xf32>
    %c0_147 = arith.constant 0 : index
    %c0_148 = arith.constant 0 : index
    %c0_149 = arith.constant 0 : index
    %392 = vector.load %arg4[%c0_147, %c0_148, %c0_149] : memref<1x2x32xf32, #tpu.memory_space<vmem>>, vector<1x2x32xf32>
    %393 = vector.shape_cast %392 : vector<1x2x32xf32> to vector<2x32xf32>
    %394 = vector.shape_cast %391 : vector<2x32xf32> to vector<1x2x32xf32>
    tpu.vector_store %arg4[%c0_147, %c0_148, %c0_149], %394 {strides = array<i32>} : memref<1x2x32xf32, #tpu.memory_space<vmem>>, vector<1x2x32xf32>,
    return
  }
  func.func @transform_0(%arg0: i32) -> (i32, i32, i32, i32) {
    %c0_i32 = arith.constant 0 : i32
    %c0_i32_0 = arith.constant 0 : i32
    %c0_i32_1 = arith.constant 0 : i32
    %c0_i32_2 = arith.constant 0 : i32
    return %arg0, %c0_i32, %c0_i32_0, %c0_i32_1 : i32, i32, i32, i32
  }
  func.func @transform_1(%arg0: i32) -> (i32, i32, i32) {
    %c0_i32 = arith.constant 0 : i32
    %c0_i32_0 = arith.constant 0 : i32
    %c0_i32_1 = arith.constant 0 : i32
    return %arg0, %c0_i32, %c0_i32_0 : i32, i32, i32
  }
  func.func @transform_2(%arg0: i32) -> (i32, i32, i32) {
    %c0_i32 = arith.constant 0 : i32
    %c0_i32_0 = arith.constant 0 : i32
    %c0_i32_1 = arith.constant 0 : i32
    return %arg0, %c0_i32, %c0_i32_0 : i32, i32, i32
  }
  func.func @transform_3(%arg0: i32) -> (i32, i32, i32) {
    %c0_i32 = arith.constant 0 : i32
    %c0_i32_0 = arith.constant 0 : i32
    %c0_i32_1 = arith.constant 0 : i32
    return %arg0, %c0_i32, %c0_i32_0 : i32, i32, i32
  }
}

module attributes {stable_mosaic.version = 11 : i64} {
  func.func @_jointemb_kernel(%arg0: memref<2x160xf32, #tpu.memory_space<vmem>>, %arg1: memref<376x160xf32, #tpu.memory_space<vmem>>, %arg2: memref<1x128xf32, #tpu.memory_space<vmem>>) attributes {dimension_semantics = [], scalar_prefetch = 0 : i64, scratch_operands = 0 : i64, tpu.core_type = #tpu.core_type<tc>} {
    %c0 = arith.constant 0 : index
    %c0_0 = arith.constant 0 : index
    %0 = vector.load %arg0[%c0, %c0_0] : memref<2x160xf32, #tpu.memory_space<vmem>>, vector<2x160xf32>
    %c0_1 = arith.constant 0 : index
    %c0_2 = arith.constant 0 : index
    %1 = vector.load %arg1[%c0_1, %c0_2] : memref<376x160xf32, #tpu.memory_space<vmem>>, vector<160x160xf32>
    %c160 = arith.constant 160 : index
    %c0_3 = arith.constant 0 : index
    %2 = vector.load %arg1[%c160, %c0_3] : memref<376x160xf32, #tpu.memory_space<vmem>>, vector<96x160xf32>
    %c256 = arith.constant 256 : index
    %c0_4 = arith.constant 0 : index
    %3 = vector.load %arg1[%c256, %c0_4] : memref<376x160xf32, #tpu.memory_space<vmem>>, vector<96x160xf32>
    %c352 = arith.constant 352 : index
    %c0_5 = arith.constant 0 : index
    %4 = vector.load %arg1[%c352, %c0_5] : memref<376x160xf32, #tpu.memory_space<vmem>>, vector<1x160xf32>
    %c360 = arith.constant 360 : index
    %c0_6 = arith.constant 0 : index
    %5 = vector.load %arg1[%c360, %c0_6] : memref<376x160xf32, #tpu.memory_space<vmem>>, vector<1x160xf32>
    %c368 = arith.constant 368 : index
    %c0_7 = arith.constant 0 : index
    %6 = vector.load %arg1[%c368, %c0_7] : memref<376x160xf32, #tpu.memory_space<vmem>>, vector<1x160xf32>
    %cst = arith.constant dense<0.000000e+00> : vector<2x160xf32>
    %7 = tpu.matmul %0, %1, %cst {dimension_numbers = #tpu.dot_dimension_numbers<[1], [0], [0], [1], [0, 0, 1, 1], [], []>} : vector<2x160xf32>, vector<160x160xf32>, vector<2x160xf32> -> vector<2x160xf32>
    %8 = vector.broadcast %4 : vector<1x160xf32> to vector<2x160xf32>
    %9 = arith.addf %7, %8 : vector<2x160xf32>
    %10 = vector.extract_strided_slice %9 {offsets = [0, 0], sizes = [2, 96], strides = [1, 1]} : vector<2x160xf32> to vector<2x96xf32>
    %11 = vector.extract_strided_slice %9 {offsets = [0, 96], sizes = [2, 32], strides = [1, 1]} : vector<2x160xf32> to vector<2x32xf32>
    %12 = vector.extract_strided_slice %9 {offsets = [0, 128], sizes = [2, 32], strides = [1, 1]} : vector<2x160xf32> to vector<2x32xf32>
    %13 = math.tanh %10 : vector<2x96xf32>
    %cst_8 = arith.constant dense<0.000000e+00> : vector<2x160xf32>
    %14 = tpu.matmul %13, %2, %cst_8 {dimension_numbers = #tpu.dot_dimension_numbers<[1], [0], [0], [1], [0, 0, 1, 1], [], []>} : vector<2x96xf32>, vector<96x160xf32>, vector<2x160xf32> -> vector<2x160xf32>
    %15 = vector.broadcast %5 : vector<1x160xf32> to vector<2x160xf32>
    %16 = arith.addf %14, %15 : vector<2x160xf32>
    %17 = vector.extract_strided_slice %16 {offsets = [0, 0], sizes = [2, 1], strides = [1, 1]} : vector<2x160xf32> to vector<2x1xf32>
    %18 = vector.extract_strided_slice %16 {offsets = [0, 1], sizes = [2, 1], strides = [1, 1]} : vector<2x160xf32> to vector<2x1xf32>
    %19 = vector.extract_strided_slice %16 {offsets = [0, 2], sizes = [2, 1], strides = [1, 1]} : vector<2x160xf32> to vector<2x1xf32>
    %20 = arith.maximumf %17, %18 : vector<2x1xf32>
    %21 = arith.maximumf %20, %19 : vector<2x1xf32>
    %22 = arith.subf %17, %21 : vector<2x1xf32>
    %23 = math.exp %22 : vector<2x1xf32>
    %24 = arith.subf %18, %21 : vector<2x1xf32>
    %25 = math.exp %24 : vector<2x1xf32>
    %26 = arith.subf %19, %21 : vector<2x1xf32>
    %27 = math.exp %26 : vector<2x1xf32>
    %28 = arith.addf %23, %25 : vector<2x1xf32>
    %29 = arith.addf %28, %27 : vector<2x1xf32>
    %30 = tpu.reciprocal %29 {approx = true} : vector<2x1xf32> -> vector<2x1xf32>
    %31 = arith.mulf %23, %30 : vector<2x1xf32>
    %32 = vector.extract_strided_slice %0 {offsets = [0, 0], sizes = [2, 96], strides = [1, 1]} : vector<2x160xf32> to vector<2x96xf32>
    %33 = vector.broadcast %31 : vector<2x1xf32> to vector<2x96xf32>
    %34 = arith.mulf %33, %32 : vector<2x96xf32>
    %cst_9 = arith.constant dense<0.000000e+00> : vector<2x160xf32>
    %35 = tpu.matmul %34, %3, %cst_9 {dimension_numbers = #tpu.dot_dimension_numbers<[1], [0], [0], [1], [0, 0, 1, 1], [], []>} : vector<2x96xf32>, vector<96x160xf32>, vector<2x160xf32> -> vector<2x160xf32>
    %36 = vector.broadcast %6 : vector<1x160xf32> to vector<2x160xf32>
    %37 = arith.addf %35, %36 : vector<2x160xf32>
    %38 = vector.extract_strided_slice %37 {offsets = [0, 0], sizes = [2, 32], strides = [1, 1]} : vector<2x160xf32> to vector<2x32xf32>
    %39 = math.tanh %38 : vector<2x32xf32>
    %40 = arith.mulf %39, %11 : vector<2x32xf32>
    %cst_10 = arith.constant dense<0.000000e+00> : vector<2xf32>
    %41 = vector.multi_reduction <add>, %40, %cst_10 [1] : vector<2x32xf32> to vector<2xf32>
    %42 = vector.shape_cast %41 : vector<2xf32> to vector<2x1xf32>
    %43 = arith.mulf %39, %39 : vector<2x32xf32>
    %cst_11 = arith.constant dense<0.000000e+00> : vector<2xf32>
    %44 = vector.multi_reduction <add>, %43, %cst_11 [1] : vector<2x32xf32> to vector<2xf32>
    %45 = vector.shape_cast %44 : vector<2xf32> to vector<2x1xf32>
    %cst_12 = arith.constant 1.000000e-16 : f32
    %46 = vector.broadcast %cst_12 : f32 to vector<2x1xf32>
    %47 = arith.maximumf %45, %46 : vector<2x1xf32>
    %48 = arith.mulf %11, %11 : vector<2x32xf32>
    %cst_13 = arith.constant dense<0.000000e+00> : vector<2xf32>
    %49 = vector.multi_reduction <add>, %48, %cst_13 [1] : vector<2x32xf32> to vector<2xf32>
    %50 = vector.shape_cast %49 : vector<2xf32> to vector<2x1xf32>
    %cst_14 = arith.constant 1.000000e-16 : f32
    %51 = vector.broadcast %cst_14 : f32 to vector<2x1xf32>
    %52 = arith.maximumf %50, %51 : vector<2x1xf32>
    %53 = arith.mulf %47, %52 : vector<2x1xf32>
    %54 = math.rsqrt %53 : vector<2x1xf32>
    %55 = arith.mulf %42, %54 : vector<2x1xf32>
    %56 = arith.mulf %39, %12 : vector<2x32xf32>
    %cst_15 = arith.constant dense<0.000000e+00> : vector<2xf32>
    %57 = vector.multi_reduction <add>, %56, %cst_15 [1] : vector<2x32xf32> to vector<2xf32>
    %58 = vector.shape_cast %57 : vector<2xf32> to vector<2x1xf32>
    %59 = arith.mulf %39, %39 : vector<2x32xf32>
    %cst_16 = arith.constant dense<0.000000e+00> : vector<2xf32>
    %60 = vector.multi_reduction <add>, %59, %cst_16 [1] : vector<2x32xf32> to vector<2xf32>
    %61 = vector.shape_cast %60 : vector<2xf32> to vector<2x1xf32>
    %cst_17 = arith.constant 1.000000e-16 : f32
    %62 = vector.broadcast %cst_17 : f32 to vector<2x1xf32>
    %63 = arith.maximumf %61, %62 : vector<2x1xf32>
    %64 = arith.mulf %12, %12 : vector<2x32xf32>
    %cst_18 = arith.constant dense<0.000000e+00> : vector<2xf32>
    %65 = vector.multi_reduction <add>, %64, %cst_18 [1] : vector<2x32xf32> to vector<2xf32>
    %66 = vector.shape_cast %65 : vector<2xf32> to vector<2x1xf32>
    %cst_19 = arith.constant 1.000000e-16 : f32
    %67 = vector.broadcast %cst_19 : f32 to vector<2x1xf32>
    %68 = arith.maximumf %66, %67 : vector<2x1xf32>
    %69 = arith.mulf %63, %68 : vector<2x1xf32>
    %70 = math.rsqrt %69 : vector<2x1xf32>
    %71 = arith.mulf %58, %70 : vector<2x1xf32>
    %cst_20 = arith.constant 6.000000e-01 : f32
    %72 = vector.broadcast %cst_20 : f32 to vector<2x1xf32>
    %73 = arith.subf %72, %55 : vector<2x1xf32>
    %74 = arith.addf %73, %71 : vector<2x1xf32>
    %cst_21 = arith.constant 9.99999997E-7 : f32
    %75 = vector.broadcast %cst_21 : f32 to vector<2x1xf32>
    %76 = arith.maximumf %74, %75 : vector<2x1xf32>
    %cst_22 = arith.constant dense<0.000000e+00> : vector<1xf32>
    %77 = vector.multi_reduction <add>, %76, %cst_22 [0] : vector<2x1xf32> to vector<1xf32>
    %78 = vector.shape_cast %77 : vector<1xf32> to vector<1x1xf32>
    %cst_23 = arith.constant 5.000000e-01 : f32
    %79 = vector.broadcast %cst_23 : f32 to vector<1x1xf32>
    %80 = arith.mulf %78, %79 : vector<1x1xf32>
    %81 = vector.shape_cast %80 : vector<1x1xf32> to vector<1x1xf32>
    %82 = vector.broadcast %81 : vector<1x1xf32> to vector<1x128xf32>
    %c0_24 = arith.constant 0 : index
    %c0_25 = arith.constant 0 : index
    %83 = vector.load %arg2[%c0_24, %c0_25] : memref<1x128xf32, #tpu.memory_space<vmem>>, vector<1x128xf32>
    tpu.vector_store %arg2[%c0_24, %c0_25], %82 {strides = array<i32>} : memref<1x128xf32, #tpu.memory_space<vmem>>, vector<1x128xf32>,
    return
  }
}

</mosaic_0001>

<bundles_post_ra>
// kernel: fwd.3
= control target key start
LH: loop header
LB: loop body
LE: loop exit
PB: predicated region body
PF: predicated region fallthrough
CT: control target
= control target key end

     0   :  { %v108_v12 = vlaneseq  ;;  %v615_v13 = vmov 1983009808   ;;  %vm128_vm0 = vcmask 261120   ;;  %s974_s0 = inlined_call_operand.vmem [shape: f32[2,160], index: 0, kind: input, shape index: {}]   ;;  %s975_s1 = inlined_call_operand.vmem [shape: f32[376,160], index: 1, kind: input, shape index: {}]   ;;  %s976_s2 = inlined_call_operand.hbm [shape: f32[1,128], index: 2, kind: output, shape index: {}]  }
   0x1   :  { %v14_v0 = vld [vmem:[%s975_s1 + $0x8] sm:$0xff]  ;;  %v16_v1 = vld [vmem:[%s975_s1 + $0x18] sm:$0xff]  ;;  %v13_v2 = vld [vmem:[%s975_s1] sm:$0xff]  ;;  %v120_v14 = vunpack.c.l.s4 %v615_v13 }
   0x2   :  { %v477_v3 = vpack.c.bf16 %v16_v1, %v14_v0  ;;  %v15_v4 = vld [vmem:[%s975_s1 + $0x10] sm:$0xff]  ;;  %v18_v5 = vld [vmem:[%s975_s1 + $0x28] sm:$0xff]  ;;  %v20_v6 = vld [vmem:[%s975_s1 + $0x38] sm:$0xff]  ;;  %v681_v22 = vshrl.u32 %v108_v12, 7 }
   0x3   :  { %v479_v7 = vpack.c.bf16 %v15_v4, %v13_v2  ;;  %v481_v8 = vpack.c.bf16 %v20_v6, %v18_v5  ;;  %v17_v9 = vld [vmem:[%s975_s1 + $0x20] sm:$0xff]  ;;  %v19_v10 = vld [vmem:[%s975_s1 + $0x30] sm:$0xff]  ;;  %v22_v11 = vld [vmem:[%s975_s1 + $0x48] sm:$0xff]  ;;  %v121_v23 = vunpack.c.0.s8 %v120_v14 }
   0x4   :  { %478 = vmatprep.subr.bf16.mxu0 %v477_v3  ;;  %v24_v15 = vld [vmem:[%s975_s1 + $0x58] sm:$0xff]  ;;  %v483_v16 = vpack.c.bf16 %v19_v10, %v17_v9  ;;  %v21_v18 = vld [vmem:[%s975_s1 + $0x40] sm:$0xff]  ;;  %v23_v19 = vld [vmem:[%s975_s1 + $0x50] sm:$0xff] }
   0x5   :  { %480 = vmatpush1.bf16.msra.mxu0 %v479_v7  ;;  %v485_v17 = vpack.c.bf16 %v24_v15, %v22_v11  ;;  %v26_v20 = vld [vmem:[%s975_s1 + $0x68] sm:$0xff]  ;;  %v28_v21 = vld [vmem:[%s975_s1 + $0x78] sm:$0xff]  ;;  %v487_v24 = vpack.c.bf16 %v23_v19, %v21_v18  ;;  %v25_v26 = vld [vmem:[%s975_s1 + $0x60] sm:$0xff]  ;;  %v124_v30 = vsub.s32 %v121_v23, %v681_v22 }
   0x6   :  { %482 = vmatprep.subr.bf16.mxu0 %v481_v8  ;;  %v489_v25 = vpack.c.bf16 %v28_v21, %v26_v20  ;;  %v27_v27 = vld [vmem:[%s975_s1 + $0x70] sm:$0xff]  ;;  %v30_v28 = vld [vmem:[%s975_s1 + $0x88] sm:$0xff]  ;;  %v32_v29 = vld [vmem:[%s975_s1 + $0x98] sm:$0xff] }
   0x7   :  { %v491_v31 = vpack.c.bf16 %v27_v27, %v25_v26  ;;  %v29_v32 = vld [vmem:[%s975_s1 + $0x80] sm:$0xff]  ;;  %v31_v33 = vld [vmem:[%s975_s1 + $0x90] sm:$0xff]  ;;  %v34_v34 = vld [vmem:[%s975_s1 + $0xa8] sm:$0xff]  ;;  %v493_v35 = vpack.c.bf16 %v32_v29, %v30_v28 }
   0x8   :  { %v36_v36 = vld [vmem:[%s975_s1 + $0xb8] sm:$0xff]  ;;  %v711_v37 = vld [vmem:[%s974_s0] sm:$0xf]  ;;  %v54_v38 = vld [vmem:[%s975_s1 + $0x148] sm:$0xff]  ;;  %v495_v48 = vpack.c.bf16 %v31_v33, %v29_v32 }
   0x9   :  { %484 = vmatpush1.bf16.msra.mxu0 %v483_v16  ;;  %v717_v39 = vrot.slane %v711_v37, %v124_v30  ;;  %v56_v40 = vld [vmem:[%s975_s1 + $0x158] sm:$0xff]  ;;  %v53_v41 = vld [vmem:[%s975_s1 + $0x140] sm:$0xff]  ;;  %v55_v42 = vld [vmem:[%s975_s1 + $0x150] sm:$0xff]  ;;  %v497_v54 = vpack.c.bf16 %v36_v36, %v34_v34 }
   0xa   :  { %486 = vmatprep.subr.bf16.mxu0 %v485_v17  ;;  %v517_v43 = vpack.c.bf16 %v56_v40, %v54_v38  ;;  %v519_v44 = vpack.c.bf16 %v55_v42, %v53_v41  ;;  %v58_v45 = vld [vmem:[%s975_s1 + $0x168] sm:$0xff]  ;;  %v60_v46 = vld [vmem:[%s975_s1 + $0x178] sm:$0xff]  ;;  %v57_v47 = vld [vmem:[%s975_s1 + $0x160] sm:$0xff] }
   0xb   :  { %v126_v49 = vcombine.high %v717_v39, %v717_v39  ;;  %v521_v50 = vpack.c.bf16 %v60_v46, %v58_v45  ;;  %v59_v51 = vld [vmem:[%s975_s1 + $0x170] sm:$0xff]  ;;  %v62_v52 = vld [vmem:[%s975_s1 + $0x188] sm:$0xff]  ;;  %v64_v53 = vld [vmem:[%s975_s1 + $0x198] sm:$0xff] }
   0xc   :  { %v33_v55 = vld [vmem:[%s975_s1 + $0xa0] sm:$0xff]  ;;  %v35_v56 = vld [vmem:[%s975_s1 + $0xb0] sm:$0xff]  ;;  %518 = vmatprep.subr.bf16.mxu1 %v517_v43  ;;  %v38_v57 = vld [vmem:[%s975_s1 + $0xc8] sm:$0xff]  ;;  %v523_v59 = vpack.c.bf16 %v59_v51, %v57_v47 }
   0xd   :  { %488 = vmatpush1.bf16.msra.mxu0 %v487_v24  ;;  %v40_v58 = vld [vmem:[%s975_s1 + $0xd8] sm:$0xff]  ;;  %474 = vmatprep.mubr.msk.f32.mxu0 %vm128_vm0, %v126_v49 }
   0xe   :  { %490 = vmatprep.subr.bf16.mxu0 %v489_v25  ;;  %520 = vmatpush1.bf16.msra.mxu1 %v519_v44 }
  0x11   :  { %492 = vmatpush1.bf16.msra.mxu0 %v491_v31 }
  0x12   :  { %494 = vmatprep.subr.bf16.mxu0 %v493_v35 }
  0x13   :  { %7 = vsyncpa [#allocation3], 0  ;;  %522 = vmatprep.subr.bf16.mxu1 %v521_v50  ;;  %v525_v60 = vpack.c.bf16 %v64_v53, %v62_v52  ;;  %v61_v61 = vld [vmem:[%s975_s1 + $0x180] sm:$0xff]  ;;  %v63_v62 = vld [vmem:[%s975_s1 + $0x190] sm:$0xff]  ;;  %v499_v63 = vpack.c.bf16 %v35_v56, %v33_v55  ;;  %v501_v0 = vpack.c.bf16 %v40_v58, %v38_v57  ;;  %v616_v38 = vmov 0.0   ;;  %s617_s28 = smov 127  }
  0x14   :  { %v37_v1 = vld [vmem:[%s975_s1 + $0xc0] sm:$0xff]  ;;  %v39_v2 = vld [vmem:[%s975_s1 + $0xd0] sm:$0xff]  ;;  %v42_v3 = vld [vmem:[%s975_s1 + $0xe8] sm:$0xff]  ;;  %524 = vmatpush1.bf16.msra.mxu1 %v523_v59  ;;  %v527_v5 = vpack.c.bf16 %v63_v62, %v61_v61  ;;  %277 = vmatprep.mubr.f32.mxu1 %v616_v38  ;;  %v847_v44 = vsub.s32 0, %v681_v22  ;;  %vm209_vm1 = vcmask 785408   ;;  %s618_s29 = smov 126  }
  0x15   :  { %496 = vmatpush1.bf16.msra.mxu0 %v495_v48  ;;  %v44_v4 = vld [vmem:[%s975_s1 + $0xf8] sm:$0xff]  ;;  %526 = vmatprep.subr.bf16.mxu1 %v525_v60  ;;  %v503_v6 = vpack.c.bf16 %v39_v2, %v37_v1  ;;  %v41_v8 = vld [vmem:[%s975_s1 + $0xe0] sm:$0xff]  ;;  %v43_v9 = vld [vmem:[%s975_s1 + $0xf0] sm:$0xff]  ;;  %s619_s30 = smov 1   ;;  %s620_s3 = smov 2   ;;  %vm411_vm2 = vcmask 254976  }
  0x16   :  { %498 = vmatprep.subr.bf16.mxu0 %v497_v54  ;;  %v505_v7 = vpack.c.bf16 %v44_v4, %v42_v3  ;;  %v46_v10 = vld [vmem:[%s975_s1 + $0x108] sm:$0xff]  ;;  %v48_v11 = vld [vmem:[%s975_s1 + $0x118] sm:$0xff]  ;;  %v507_v12 = vpack.c.bf16 %v43_v9, %v41_v8  ;;  %v45_v14 = vld [vmem:[%s975_s1 + $0x100] sm:$0xff]  ;;  %v621_v3 = vmov 0   ;;  %s622_s15 = smov 32   ;;  %vm447_vm3 = vcmask 1041408  }
  0x17   :  { %v509_v13 = vpack.c.bf16 %v48_v11, %v46_v10  ;;  %v47_v15 = vld [vmem:[%s975_s1 + $0x110] sm:$0xff]  ;;  %v50_v16 = vld [vmem:[%s975_s1 + $0x128] sm:$0xff]  ;;  %v52_v17 = vld [vmem:[%s975_s1 + $0x138] sm:$0xff]  ;;  %574 = vset.pattern.permute.xlu0 %v621_v3 }
  0x18   :  { %528 = vmatpush1.bf16.msra.mxu1 %v527_v5  ;;  %v511_v18 = vpack.c.bf16 %v47_v15, %v45_v14  ;;  %v513_v19 = vpack.c.bf16 %v52_v17, %v50_v16  ;;  %v49_v20 = vld [vmem:[%s975_s1 + $0x120] sm:$0xff]  ;;  %v51_v21 = vld [vmem:[%s975_s1 + $0x130] sm:$0xff]  ;;  %v66_v24 = vld [vmem:[%s975_s1 + $0x1a8] sm:$0xff] }
  0x19   :  { %500 = vmatpush1.bf16.msra.mxu0 %v499_v63  ;;  %v515_v23 = vpack.c.bf16 %v51_v21, %v49_v20  ;;  %v68_v25 = vld [vmem:[%s975_s1 + $0x1b8] sm:$0xff]  ;;  %v65_v27 = vld [vmem:[%s975_s1 + $0x1a0] sm:$0xff]  ;;  %v67_v28 = vld [vmem:[%s975_s1 + $0x1b0] sm:$0xff] }
  0x1a   :  { %502 = vmatprep.subr.bf16.mxu0 %v501_v0  ;;  %v529_v26 = vpack.c.bf16 %v68_v25, %v66_v24  ;;  %v531_v29 = vpack.c.bf16 %v67_v28, %v65_v27  ;;  %v70_v30 = vld [vmem:[%s975_s1 + $0x1c8] sm:$0xff]  ;;  %v72_v31 = vld [vmem:[%s975_s1 + $0x1d8] sm:$0xff]  ;;  %v69_v32 = vld [vmem:[%s975_s1 + $0x1c0] sm:$0xff] }
  0x1b   :  { %v533_v33 = vpack.c.bf16 %v72_v31, %v70_v30  ;;  %v71_v34 = vld [vmem:[%s975_s1 + $0x1d0] sm:$0xff]  ;;  %v74_v35 = vld [vmem:[%s975_s1 + $0x1e8] sm:$0xff]  ;;  %v76_v36 = vld [vmem:[%s975_s1 + $0x1f8] sm:$0xff] }
  0x1c   :  { %530 = vmatprep.subr.bf16.mxu1 %v529_v26  ;;  %v537_v40 = vpack.c.bf16 %v76_v36, %v74_v35  ;;  %v73_v41 = vld [vmem:[%s975_s1 + $0x1e0] sm:$0xff]  ;;  %v75_v42 = vld [vmem:[%s975_s1 + $0x1f0] sm:$0xff]  ;;  %v82_v11 = vld [vmem:[%s975_s1 + $0x228] sm:$0xff] }
  0x1d   :  { %504 = vmatpush1.bf16.msra.mxu0 %v503_v6  ;;  %532 = vmatpush1.bf16.msra.mxu1 %v531_v29  ;;  %v539_v43 = vpack.c.bf16 %v75_v42, %v73_v41  ;;  %v852_v45 = vld [vmem:[%s975_s1 + $0x2c0] ss:$8 sm:$0x3]  ;;  %v472_v51 = vld [vmem:[%s975_s1 + $0x2d0] ss:$8 sm:$0x3] }
  0x1e   :  { %506 = vmatprep.subr.bf16.mxu0 %v505_v7  ;;  %534 = vmatprep.subr.bf16.mxu1 %v533_v33  ;;  %v111_v46 = vrot.slane %v852_v45, %v847_v44  ;;  %v207_v52 = vrot.slane %v472_v51, %v847_v44  ;;  %v78_v6 = vld [vmem:[%s975_s1 + $0x208] sm:$0xff]  ;;  %v80_v7 = vld [vmem:[%s975_s1 + $0x218] sm:$0xff]  ;;  %v77_v8 = vld [vmem:[%s975_s1 + $0x200] sm:$0xff] }
  0x1f   :  { %v541_v9 = vpack.c.bf16 %v80_v7, %v78_v6  ;;  %v79_v10 = vld [vmem:[%s975_s1 + $0x210] sm:$0xff]  ;;  %v81_v15 = vld [vmem:[%s975_s1 + $0x220] sm:$0xff]  ;;  %v86_v17 = vld [vmem:[%s975_s1 + $0x248] sm:$0xff] }
  0x20   :  { %v83_v16 = vld [vmem:[%s975_s1 + $0x230] sm:$0xff]  ;;  %v85_v21 = vld [vmem:[%s975_s1 + $0x240] sm:$0xff]  ;;  %v90_v24 = vld [vmem:[%s975_s1 + $0x268] sm:$0xff] }
  0x21   :  { %508 = vmatpush1.bf16.msra.mxu0 %v507_v12  ;;  %v84_v12 = vld [vmem:[%s975_s1 + $0x238] sm:$0xff]  ;;  %v89_v28 = vld [vmem:[%s975_s1 + $0x260] sm:$0xff]  ;;  %v91_v29 = vld [vmem:[%s975_s1 + $0x270] sm:$0xff] }
  0x22   :  { %510 = vmatprep.subr.bf16.mxu0 %v509_v13  ;;  %v543_v13 = vpack.c.bf16 %v79_v10, %v77_v8  ;;  %v545_v14 = vpack.c.bf16 %v84_v12, %v82_v11  ;;  %v92_v25 = vld [vmem:[%s975_s1 + $0x278] sm:$0xff]  ;;  %v94_v30 = vld [vmem:[%s975_s1 + $0x288] sm:$0xff]  ;;  %v95_v35 = vld [vmem:[%s975_s1 + $0x290] sm:$0xff] }
  0x23   :  { %v553_v27 = vpack.c.bf16 %v92_v25, %v90_v24  ;;  %v96_v31 = vld [vmem:[%s975_s1 + $0x298] sm:$0xff]  ;;  %v98_v36 = vld [vmem:[%s975_s1 + $0x2a8] sm:$0xff]  ;;  %v97_v41 = vld [vmem:[%s975_s1 + $0x2a0] sm:$0xff] }
  0x24   :  { %v557_v33 = vpack.c.bf16 %v96_v31, %v94_v30  ;;  %v99_v42 = vld [vmem:[%s975_s1 + $0x2b0] sm:$0xff] }
  0x25   :  { %512 = vmatpush1.bf16.msra.mxu0 %v511_v18  ;;  %v88_v18 = vld [vmem:[%s975_s1 + $0x258] sm:$0xff] }
  0x26   :  { %514 = vmatprep.subr.bf16.mxu0 %v513_v19  ;;  %v547_v19 = vpack.c.bf16 %v83_v16, %v81_v15  ;;  %v549_v20 = vpack.c.bf16 %v88_v18, %v86_v17 }
  0x29   :  { %516 = vmatpush1.bf16.msra.mxu0 %v515_v23  ;;  %v87_v23 = vld [vmem:[%s975_s1 + $0x250] sm:$0xff] }
  0x2a   :  { %v551_v26 = vpack.c.bf16 %v87_v23, %v85_v21 }
  0x2c   :  { %196 = vmatmul.mubr.f32.vlgmr.msra.gmra.mrb[0].mxu0 %v717_v39  ;;  %v535_v39 = vpack.c.bf16 %v71_v34, %v69_v32  ;;  %v555_v32 = vpack.c.bf16 %v91_v29, %v89_v28  ;;  %v93_v34 = vld [vmem:[%s975_s1 + $0x280] sm:$0xff] }
  0x2e   :  { %536 = vmatpush1.bf16.msra.mxu1 %v535_v39  ;;  %v559_v39 = vpack.c.bf16 %v95_v35, %v93_v34 }
  0x2f   :  { %538 = vmatprep.subr.bf16.mxu1 %v537_v40 }
  0x32   :  { %540 = vmatpush1.bf16.msra.mxu1 %v539_v43  ;;  %v563_v43 = vpack.c.bf16 %v99_v42, %v97_v41 }
  0x33   :  { %542 = vmatprep.subr.bf16.mxu1 %v541_v9 }
  0xff   :  { %v197_v47 = vpop.f32.mrb[0].mxu0 }
 0x100   :  { %v198_v48 = vadd.f32 %v197_v47, %v111_v46  ;;  %v856_v49 = vpop.f32.mrb[1].mxu0 }
 0x102   :  { %575 = vtanh.f32 %v198_v48  ;;  %v420_v5 = vmul.f32 %v198_v48, %v198_v48 }
 0x10c   :  { %v576_v50 = vpop.eup %575 }
 0x10d   :  { %475 = vmatmul.mubr.msk.f32.vlgmr.msra.gmra.mrb[0].mxu1 %vm209_vm1, %v576_v50 }
 0x10e   :  { %399 = vmatprep.mubr.f32.mxu1 %v616_v38  ;;  %544 = vmatpush1.bf16.msra.mxu1 %v543_v13  ;;  %v100_v38 = vld [vmem:[%s975_s1 + $0x2b8] sm:$0xff] }
 0x10f   :  { %546 = vmatprep.subr.bf16.mxu1 %v545_v14  ;;  %v561_v40 = vpack.c.bf16 %v100_v38, %v98_v36 }
 0x112   :  { %548 = vmatpush1.bf16.msra.mxu1 %v547_v19 }
 0x113   :  { %550 = vmatprep.subr.bf16.mxu1 %v549_v20 }
 0x116   :  { %552 = vmatpush1.bf16.msra.mxu1 %v551_v26 }
 0x117   :  { %554 = vmatprep.subr.bf16.mxu1 %v553_v27 }
 0x11a   :  { %556 = vmatpush1.bf16.msra.mxu1 %v555_v32 }
 0x11b   :  { %558 = vmatprep.subr.bf16.mxu1 %v557_v33 }
 0x11e   :  { %560 = vmatpush1.bf16.msra.mxu1 %v559_v39 }
 0x11f   :  { %562 = vmatprep.subr.bf16.mxu1 %v561_v40 }
 0x122   :  { %564 = vmatpush1.bf16.msra.mxu1 %v563_v43 }
 0x1e0   :  { %v279_v53 = vpop.f32.mrb[0].mxu1 }
 0x1e1   :  { %v863_v54 = vadd.f32 %v279_v53, %v207_v52  ;;  %v281_v55 = vpop.f32.mrb[1].mxu1 }
 0x1e3   :  { %284 = vrot.lane.b32.xlu0 %v863_v54, %s617_s28 }
 0x1e7   :  { %288 = vrot.lane.b32.xlu0 %v863_v54, %s618_s29 }
 0x255   :  { %v285_v56 = vpop.permute.xlu0 %284 }
 0x256   :  { %v287_v57 = vmax.f32 %v863_v54, %v285_v56 }
 0x259   :  { %v289_v58 = vpop.permute.xlu0 %288 }
 0x25a   :  { %v868_v59 = vmax.f32 %v287_v57, %v289_v58 }
 0x25c   :  { %296 = vrot.lane.b32.xlu1 %v868_v59, %s619_s30  ;;  %v292_v46 = vsub.f32 %v863_v54, %v868_v59 }
 0x25e   :  { %v293_v47 = vmul.f32 1.442695, %v292_v46 }
 0x260   :  { %302 = vrot.lane.b32.xlu1 %v868_v59, %s620_s3 }
 0x2ce   :  { %v297_v60 = vpop.permute.xlu1 %296 }
 0x2cf   :  { %v299_v61 = vsub.f32 %v863_v54, %v297_v60 }
 0x2d1   :  { %v300_v62 = vmul.f32 1.442695, %v299_v61 }
 0x2d2   :  { %v303_v63 = vpop.permute.xlu1 %302 }
 0x2d3   :  { %577 = vpow2.f32 %v300_v62  ;;  %v305_v0 = vsub.f32 %v863_v54, %v303_v63  ;;  %v473_v54 = vld [vmem:[%s975_s1 + $0x2e0] ss:$8 sm:$0x3]  ;;  %s623_s1 = smov [#allocation2]  }
 0x2d4   :  { %v330_v59 = vrot.slane %v473_v54, %v847_v44  ;;  %s463_s25 = sshll.u32 %s623_s1, 4  ;;  %s464_s25 = int_to_ptr.vmem [resolvable:$true] %s463_s25 }
 0x2d5   :  { %v306_v1 = vmul.f32 1.442695, %v305_v0  ;;  %s591_s26 = scalar_lea.vmem %s464_s25, 16  ;;  %s595_s27 = scalar_lea.vmem %s464_s25, 32 }
 0x2d6   :  { %p592_p0 = scmp.ne.s32.totalorder %s464_s25, %s591_s26  ;;  %p596_p1 = scmp.lt.s32.totalorder %s464_s25, %s464_s25 }
 0x2d7   :  { %579 = vpow2.f32 %v306_v1  ;;  %v114_v1 = vsub.s32 1, %v681_v22  ;;  %p597_p2 = scmp.lt.s32.totalorder %s595_s27, %s591_s26 }
 0x2d8   :  { %581 = vpow2.f32 %v293_v47 }
 0x2d9   :  { %p598_p3 = por %p597_p2, %p596_p1 }
 0x2db   :  { %p599_p4 = pnand %p598_p3, %p592_p0 }
 0x2dd   :  { %v578_v2 = vpop.eup %577 }
 0x2de   :  { %309 = vrot.lane.b32.xlu0 %v578_v2, %s617_s28  ;;  %v115_v2 = vrot.slane %v852_v45, %v114_v1 }
 0x2e0   :  { %v200_v3 = vadd.f32 %v856_v49, %v115_v2 }
 0x2e1   :  { %v580_v4 = vpop.eup %579 }
 0x2e2   :  { %314 = vrot.lane.b32.xlu1 %v580_v4, %s618_s29  ;;  %v582_v50 = vpop.eup %581  ;;  %v436_v8 = vmul.f32 %v200_v3, %v200_v3 }
 0x2e4   :  { %v437_v9 = vsel %vm411_vm2, %v436_v8, 0.0 }
 0x2e6   :  { %422 = vrot.lane.b32.xlu1 %v420_v5, %s622_s15 }
 0x2ea   :  { %407 = vrot.lane.b32.xlu1 %v198_v48, %s622_s15 }
 0x350   :  { %v310_v48 = vpop.permute.xlu0 %309 }
 0x351   :  { %v312_v51 = vadd.f32 %v582_v50, %v310_v48 }
 0x354   :  { %v315_v52 = vpop.permute.xlu1 %314 }
 0x355   :  { %v317_v53 = vadd.f32 %v315_v52, %v312_v51 }
 0x357   :  { %583 = vrcp.f32 %v317_v53 }
 0x358   :  { %v423_v55 = vpop.permute.xlu1 %422 }
 0x359   :  { %v425_v56 = vsel %vm411_vm2, %v423_v55, 0.0 }
 0x35a   :  { %426 = vadd.xlane.f32.xlu1 %v425_v56 }
 0x35c   :  { %v408_v44 = vpop.permute.xlu1 %407 }
 0x361   :  { %v584_v57 = vpop.eup %583 }
 0x362   :  { %v319_v58 = vmul.f32 %v584_v57, %v582_v50 }
 0x364   :  { %322 = vperm.xlu0 %574, %v319_v58  }
 0x3e3   :  { %v323_v60 = vpop.permute.xlu0 %322 }
 0x3e4   :  { %v325_v61 = vmul.f32 %v323_v60, %v711_v37 }
 0x3e6   :  { %476 = vmatmul.mubr.msk.f32.vlgmr.msra.gmra.mrb[2].mxu1 %vm209_vm1, %v325_v61 }
 0x3e7   :  { %v427_v45 = vpop.xlane.xlu1 %426 }
 0x3e8   :  { %v428_v11 = vmax.f32 %v427_v45, 1e-16 }
 0x4b9   :  { %v401_v62 = vpop.f32.mrb[2].mxu1 }
 0x4ba   :  { %v402_v63 = vadd.f32 %v401_v62, %v330_v59  ;;  %v403_v0 = vpop.f32.mrb[3].mxu1 }
 0x4bc   :  { %585 = vtanh.f32 %v402_v63 }
 0x4c6   :  { %v586_v4 = vpop.eup %585 }
 0x4c7   :  { %v432_v37 = vmul.f32 %v586_v4, %v200_v3  ;;  %v415_v5 = vmul.f32 %v586_v4, %v586_v4  ;;  %v410_v10 = vmul.f32 %v586_v4, %v408_v44 }
 0x4c9   :  { %v433_v6 = vsel %vm411_vm2, %v432_v37, 0.0  ;;  %v416_v7 = vsel %vm411_vm2, %v415_v5, 0.0  ;;  %v412_v22 = vsel %vm411_vm2, %v410_v10, 0.0 }
 0x4ca   :  { %434 = vadd.xlane.f32.xlu1 %v433_v6  ;;  %417 = vadd.xlane.f32.xlu0 %v416_v7 }
 0x4ce   :  { %438 = vadd.xlane.f32.xlu0 %v437_v9 }
 0x4d2   :  { %413 = vadd.xlane.f32.xlu0 %v412_v22 }
 0x557   :  { %v418_v49 = vpop.xlane.xlu0 %417  ;;  %v435_v21 = vpop.xlane.xlu1 %434 }
 0x558   :  { %v419_v12 = vmax.f32 %v418_v49, 1e-16 }
 0x55a   :  { %v429_v13 = vmul.f32 %v428_v11, %v419_v12 }
 0x55b   :  { %v439_v14 = vpop.xlane.xlu0 %438 }
 0x55c   :  { %587 = vrsqrt.f32 %v429_v13  ;;  %v440_v15 = vmax.f32 %v439_v14, 1e-16 }
 0x55e   :  { %v441_v16 = vmul.f32 %v440_v15, %v419_v12 }
 0x55f   :  { %v414_v18 = vpop.xlane.xlu0 %413 }
 0x560   :  { %589 = vrsqrt.f32 %v441_v16 }
 0x566   :  { %v588_v17 = vpop.eup %587 }
 0x567   :  { %v431_v19 = vmul.f32 %v588_v17, %v414_v18 }
 0x569   :  { %v444_v24 = vsub.f32 0.6, %v431_v19 }
 0x56a   :  { %v590_v20 = vpop.eup %589 }
 0x56b   :  { %v443_v23 = vmul.f32 %v590_v20, %v435_v21 }
 0x56d   :  { %v445_v25 = vadd.f32 %v444_v24, %v443_v23 }
 0x56f   :  { %v446_v26 = vmax.f32 %v445_v25, 1e-06 }
 0x571   :  { %v448_v27 = vsel %vm447_vm3, %v446_v26, 0.0 }
 0x572   :  { %v449_v28 = vrot.slane %v448_v27, 4 }
 0x574   :  { %v450_v29 = vadd.f32 %v449_v28, %v448_v27 }
 0x576   :  { %v451_v30 = vrot.slane %v450_v29, 2 }
 0x578   :  { %v452_v31 = vadd.f32 %v451_v30, %v450_v29 }
 0x57a   :  { %v453_v32 = vrot.slane %v452_v31, 1 }
 0x57c   :  { %v454_v33 = vadd.f32 %v453_v32, %v452_v31 }
 0x57e   :  { %v455_v34 = vmul.f32 0.5, %v454_v33 }
 0x580   :  { %456 = vst [vmem:[#allocation2] sm:$0x1] %v455_v34 }
 0x581   :  { %602 = shalt.err (!%p599_p4)
}
 0x582   :  { %s603_s30 = scalar_lea.hbm %s976_s2, 16 }
 0x583   :  { %p604_p5 = scmp.ne.s32.totalorder %s976_s2, %s603_s30  ;;  %p607_p6 = scmp.lt.u32.totalorder %s603_s30, %s976_s2 }
 0x585   :  { %p609_p7 = pnand %p607_p6, %p604_p5 }
 0x587   :  { %612 = shalt.err (!%p609_p7)
}
 0x588   :  { %466 = dma.vmem_to_hbm [thread:$0]  %s464_s25, 16, %s976_s2, [#allocation3]  }
 0x589   :  { %613 = dma.done.wait [#allocation3], 16  }
 0x58a   :  { %614 = vsyncadd [#allocation3], 4294967280 }
 0x58b   :  { %470 = vsyncpa [#allocation3], 1 }

// kernel: fwd.2
= control target key start
LH: loop header
LB: loop body
LE: loop exit
PB: predicated region body
PF: predicated region fallthrough
CT: control target
= control target key end

     0   :  { %s3112_s12 = smov 0   ;;  %s3485_s0 = inlined_call_operand.vmem [shape: f32[4,8,2,32], index: 0, kind: input, shape index: {}]   ;;  %s3486_s1 = inlined_call_operand.vmem [shape: s32[4,2,1], index: 1, kind: input, shape index: {}]   ;;  %s3487_s2 = inlined_call_operand.vmem [shape: f32[4,104,128], index: 2, kind: input, shape index: {}]   ;;  %s3488_s3 = inlined_call_operand.vmem [shape: f32[4,2,32], index: 3, kind: output, shape index: {}]  }
   0x1 LB: > { %s2417_s13 = sadd.s32 4294967295, %s3076_s12   ;;  %p2421_p0 = scmp.ge.s32.totalorder %s3076_s12, 1  ;;  %s3076_s12 = sphi %s3112_s12, %s13_s12  }
   0x2   : > { %p156_p1 = scmp.lt.s32.totalorder %s3076_s12, 5 }
   0x4   : > { %p157_p2 = pnand %p2421_p0, %p156_p1 }
   0x5   : > { %p188_p3 = scmp.lt.s32.totalorder (!%p157_p2), %s2417_s13, 3  ;;  %v3078_v0 = vmov (!%p157_p2), 0.0|0.0   ;;  %vm3079_vm0 = vmmov (!%p157_p2), 0   ;;  %v3080_v1 = vmov (!%p157_p2), 0.0   ;;  %vm225_vm1 = vcmask (!%p157_p2), 261120   ;;  %s3081_s22 = smov (!%p157_p2), 32  }
   0x6   : > { %160 = sbr.rel (%p157_p2) target bundleno = 5700 (0x1644), region = 32  ;;  %2853 = vmatprep.subr.bf16.mxu0 (!%p157_p2), %v3078_v0  ;;  %2859 = vmatprep.subr.bf16.mxu1 (!%p157_p2), %v3078_v0  ;;  %v3082_v39 = vmov (!%p157_p2), 0   ;;  %s3083_s27 = smov (!%p157_p2), 96   ;;  %v220_v49 = vlaneseq (!%p157_p2)  ;;  %v3085_v51 = vmov (!%p157_p2), 7   ;;  %vm2338_vm11 = vcmask (!%p157_p2), 254976  }
   0x7   : > { %2597 = vmatprep.mubr.msk.f32.mxu0 (!%p157_p2), %vm3079_vm0, %v3080_v1  ;;  %2608 = vmatprep.mubr.msk.f32.mxu1 (!%p157_p2), %vm3079_vm0, %v3080_v1  ;;  %s3084_s28 = smov (!%p157_p2), 64  }
   0x8   : > { %3020 = vset.pattern.permute.xlu1 (!%p157_p2), %v3082_v39  ;;  %3021 = vset.pattern.permute.xlu0 (!%p157_p2), %v3082_v39  ;;  %v3240_v50 = vand.u32 (!%p157_p2), 127, %v220_v49 }
   0xa   : > { %vm473_vm2 = vcmp.lt.s32.totalorder (!%p157_p2), %v3240_v50, 16 }
   0xb   : > { %v474_v52 = vsel (!%p157_p2), %vm473_vm2, 0, %v3085_v51 }
   0xd   : > { %s3490_s13 = smov (!%p188_p3, %s2417_s13), 3 }
   0xe   : > { %s2997_s14 = smul.u32 104, %s3490_s13  ;;  %s2468_s18 = sshll.u32 %s3490_s13, 4 }
   0xf   : > { %s3157_s21 = scalar_lea.vmem %s3485_s0, %s2468_s18  ;;  %s2424_s23 = sshll.u32 %s3490_s13, 1 }
  0x10   : > { %s3132_s17 = scalar_lea.vmem %s3487_s2, %s2997_s14  ;;  %v3164_v16 = vld [vmem:[%s3157_s21 + $0xe] sm:$0x3]  ;;  %v3171_v18 = vld [vmem:[%s3157_s21] sm:$0x3]  ;;  %s196_s26 = scalar_lea.vmem %s3486_s1, %s2424_s23  ;;  %v3218_v45 = vld [vmem:[%s3157_s21 + $0xc] sm:$0x3] }
  0x11   : > { %v210_v2 = vld [vmem:[%s3132_s17 + $0x20] sm:$0xff]  ;;  %v211_v3 = vld [vmem:[%s3132_s17 + $0x28] sm:$0xff]  ;;  %v212_v7 = vld [vmem:[%s3132_s17 + $0x30] sm:$0xff]  ;;  %s205_s4 = scalar_lea.vmem %s3488_s3, %s2424_s23 }
  0x12   : > { %v206_v4 = vld [vmem:[%s3132_s17] sm:$0xff]  ;;  %v3137_v5 = vpack.c.bf16 %v211_v3, %v210_v2  ;;  %v207_v6 = vld [vmem:[%s3132_s17 + $0x8] sm:$0xff]  ;;  %v213_v8 = vld [vmem:[%s3132_s17 + $0x38] sm:$0xff] }
  0x13   : > { %v3143_v9 = vpack.c.bf16 %v207_v6, %v206_v4  ;;  %v208_v10 = vld [vmem:[%s3132_s17 + $0x10] sm:$0xff]  ;;  %v209_v11 = vld [vmem:[%s3132_s17 + $0x18] sm:$0xff]  ;;  %v3148_v12 = vpack.c.bf16 %v213_v8, %v212_v7  ;;  %v214_v14 = vld [vmem:[%s3132_s17 + $0x40] sm:$0xff] }
  0x14   : > { %2855 = vmatpush3.bf16.msra.mxu0 %v3137_v5  ;;  %v3152_v13 = vpack.c.bf16 %v209_v11, %v208_v10  ;;  %v215_v15 = vld [vmem:[%s3132_s17 + $0x48] sm:$0xff]  ;;  %v216_v19 = vld [vmem:[%s3132_s17 + $0x50] sm:$0xff]  ;;  %v217_v20 = vld [vmem:[%s3132_s17 + $0x58] sm:$0xff] }
  0x15   : > { %2861 = vmatpush3.bf16.msra.mxu1 %v3143_v9  ;;  %2856 = vmatprep.subr.bf16.mxu0 %v3078_v0  ;;  %v3166_v17 = vpack.c.bf16 %v215_v15, %v214_v14  ;;  %v3181_v21 = vpack.c.bf16 %v217_v20, %v216_v19  ;;  %v3202_v27 = vld [vmem:[%s3132_s17 + $0x60] ss:$0 sm:$0xff]  ;;  %v3221_v46 = vld [vmem:[%s3157_s21 + $0x2] sm:$0x3] }
  0x16   : > { %2862 = vmatprep.subr.bf16.mxu1 %v3078_v0  ;;  %v219_v44 = vld [vmem:[%s196_s26] sm:$0x3] }
  0x18   : > { %2858 = vmatpush3.bf16.msra.mxu0 %v3148_v12 }
  0x19   : > { %2864 = vmatpush3.bf16.msra.mxu1 %v3152_v13  ;;  %2865 = vmatprep.subr.bf16.mxu0 %v3078_v0 }
  0x1a   : > { %2871 = vmatprep.subr.bf16.mxu1 %v3078_v0 }
  0x1b   : > { %2598 = vmatmul.mubr.msk.f32.vlgmr.msra.gmra.mrb[0].mxu0 %vm225_vm1, %v3164_v16 }
  0x1c   : > { %2609 = vmatmul.mubr.msk.f32.vlgmr.msra.gmra.mrb[0].mxu1 %vm225_vm1, %v3171_v18  ;;  %2867 = vmatpush3.bf16.msra.mxu0 %v3166_v17 }
  0x1d   : > { %2868 = vmatprep.subr.bf16.mxu0 %v3078_v0  ;;  %2619 = vmatprep.mubr.msk.f32.mxu0 %vm3079_vm0, %v3080_v1 }
  0x1e   : > { %2873 = vmatpush3.bf16.msra.mxu1 %v3137_v5  ;;  %2630 = vmatprep.mubr.msk.f32.mxu1 %vm3079_vm0, %v3080_v1 }
  0x1f   : > { %2874 = vmatprep.subr.bf16.mxu1 %v3078_v0 }
  0x20   : > { %2870 = vmatpush3.bf16.msra.mxu0 %v3181_v21 }
  0x21   : > { %2877 = vmatprep.subr.bf16.mxu0 %v3078_v0 }
  0x22   : > { %2876 = vmatpush3.bf16.msra.mxu1 %v3148_v12 }
  0x23   : > { %2620 = vmatmul.mubr.f32.vlgmr.msra.gmra.mrb[2].mxu0 %v3080_v1  ;;  %2883 = vmatprep.subr.bf16.mxu1 %v3078_v0 }
  0x24   : > { %2879 = vmatpush3.bf16.msra.mxu0 %v3143_v9  ;;  %2641 = vmatprep.mubr.msk.f32.mxu0 %vm3079_vm0, %v3080_v1 }
  0x25   : > { %2880 = vmatprep.subr.bf16.mxu0 %v3078_v0  ;;  %2631 = vmatmul.mubr.msk.f32.vlgmr.msra.gmra.mrb[2].mxu1 %vm225_vm1, %v3218_v45 }
  0x26   : > { %2885 = vmatpush3.bf16.msra.mxu1 %v3166_v17  ;;  %2652 = vmatprep.mubr.msk.f32.mxu1 %vm3079_vm0, %v3080_v1 }
  0x27   : > { %2886 = vmatprep.subr.bf16.mxu1 %v3078_v0 }
  0x28   : > { %2882 = vmatpush3.bf16.msra.mxu0 %v3152_v13 }
  0x29   : > { %2889 = vmatprep.subr.bf16.mxu0 %v3078_v0 }
  0x2a   : > { %2888 = vmatpush3.bf16.msra.mxu1 %v3181_v21 }
  0x2b   : > { %2642 = vmatmul.mubr.msk.f32.vlgmr.msra.gmra.mrb[4].mxu0 %vm225_vm1, %v3221_v46  ;;  %2895 = vmatprep.subr.bf16.mxu1 %v3078_v0 }
  0x2c   : > { %2891 = vmatpush3.bf16.msra.mxu0 %v3137_v5  ;;  %2663 = vmatprep.mubr.msk.f32.mxu0 %vm3079_vm0, %v3080_v1 }
  0x2d   : > { %2892 = vmatprep.subr.bf16.mxu0 %v3078_v0 }
  0x30   : > { %2894 = vmatpush3.bf16.msra.mxu0 %v3148_v12 }
  0x31   : > { %2901 = vmatprep.subr.bf16.mxu0 %v3078_v0 }
  0xee   : > { %v295_v22 = vpop.f32.mrb[0].mxu0 }
  0xef   : > { %v2599_v23 = vpop.f32.mrb[1].mxu0  ;;  %v368_v24 = vpop.f32.mrb[0].mxu1 }
  0xf0   : > { %v369_v25 = vadd.f32 %v368_v24, %v295_v22  ;;  %v2610_v26 = vpop.f32.mrb[1].mxu1 }
  0xf6   : > { %v441_v28 = vpop.f32.mrb[2].mxu0 }
  0xf7   : > { %v445_v29 = vadd.f32 %v441_v28, %v369_v25  ;;  %v2621_v30 = vpop.f32.mrb[3].mxu0 }
  0xf8   : > { %v568_v60 = vpop.f32.mrb[2].mxu1  ;;  %v3264_v30 = vld [vmem:[%s3157_s21 + $0xa] sm:$0x3] }
  0xf9   : > { %v450_v31 = vadd.f32 %v3202_v27, %v445_v29  ;;  %v2632_v62 = vpop.f32.mrb[3].mxu1  ;;  %2664 = vmatmul.mubr.msk.f32.vlgmr.msra.gmra.mrb[6].mxu0 %vm225_vm1, %v3264_v30 }
  0xfa   : > { %2903 = vmatpush3.bf16.msra.mxu0 %v3166_v17  ;;  %2685 = vmatprep.mubr.msk.f32.mxu0 %vm3079_vm0, %v3080_v1 }
  0xfb   : > { %3022 = vtanh.f32 %v450_v31  ;;  %v451_v33 = vmul.f32 0.5, %v450_v31  ;;  %v3267_v31 = vld [vmem:[%s3157_s21 + $0x4] sm:$0x3]  ;;  %2904 = vmatprep.subr.bf16.mxu0 %v3078_v0 }
  0xfd   : > { %3024 = vtanh.f32 %v451_v33  ;;  %v3086_v33 = vmov 6  }
  0xfe   : > { %v641_v61 = vpop.f32.mrb[4].mxu0  ;;  %2906 = vmatpush3.bf16.msra.mxu0 %v3181_v21 }
  0xff   : > { %v642_v63 = vadd.f32 %v641_v61, %v568_v60  ;;  %v2643_v2 = vpop.f32.mrb[5].mxu0  ;;  %2913 = vmatprep.subr.bf16.mxu0 %v3078_v0 }
 0x105   : > { %v3023_v32 = vpop.eup %3022 }
 0x106   : > { %458 = vrot.lane.b32.xlu0 %v3023_v32, %s3081_s22 }
 0x107   : > { %v3025_v34 = vpop.eup %3024 }
 0x108   : > { %v453_v35 = vmul.f32 0.5, %v3025_v34  ;;  %v746_v34 = vsel %vm473_vm2, 1, %v3086_v33 }
 0x10a   : > { %v454_v36 = vadd.f32 0.5, %v453_v35 }
 0x10c   : > { %v456_v40 = vmul.f32 0.0, %v454_v36 }
 0x178   : > { %v459_v37 = vpop.permute.xlu0 %458 }
 0x179   : > { %v461_v38 = vmul.f32 %v459_v37, %v454_v36 }
 0x17b   : > { %463 = vrot.lane.b32.xlu0 %v461_v38, %s3081_s22 }
 0x1ed   : > { %v464_v41 = vpop.permute.xlu0 %463 }
 0x1ee   : > { %v466_v42 = vadd.f32 %v464_v41, %v456_v40 }
 0x1f0   : > { %3026 = vtanh.f32 %v466_v42 }
 0x1fa   : > { %v3027_v43 = vpop.eup %3026 }
 0x1fb   : > { %469 = vrot.lane.b32.xlu1 %v3027_v43, %s3081_s22 }
 0x1ff   : > { %476 = vperm.xlu1 %3020, %v219_v44   ;;  %v838_v44 = vpop.f32.mrb[6].mxu0 }
 0x203   : > { %490 = vrot.lane.b32.xlu1 %v466_v42, %s3083_s27 }
 0x26d   : > { %v470_v47 = vpop.permute.xlu1 %469 }
 0x26e   : > { %v472_v48 = vmul.f32 %v470_v47, %v454_v36 }
 0x270   : > { %482 = vrot.lane.b32.xlu0 %v472_v48, %s3084_s28  ;;  %v2665_v48 = vpop.f32.mrb[7].mxu0 }
 0x27e   : > { %v3245_v53 = vpop.permute.xlu1 %476 }
 0x27f   : > { %vm478_vm3 = vcmp.lt.s32.totalorder %v474_v52, %v3245_v53  ;;  %vm747_vm4 = vcmp.lt.s32.totalorder %v746_v34, %v3245_v53 }
 0x280   : > { %v2431_v54 = vsel %vm478_vm3, 1.0, %v3080_v1  ;;  %v2437_v35 = vsel %vm747_vm4, 1.0, %v3080_v1 }
 0x281   : > { %v486_v55 = vsub.f32 1.0, %v2431_v54  ;;  %v755_v38 = vsub.f32 1.0, %v2437_v35 }
 0x282   : > { %v491_v56 = vpop.permute.xlu1 %490 }
 0x283   : > { %v487_v57 = vmul.f32 0.0, %v486_v55  ;;  %v493_v58 = vmul.f32 %v2431_v54, %v491_v56 }
 0x285   : > { %v494_v59 = vadd.f32 %v493_v58, %v487_v57 }
 0x287   : > { %726 = vrot.lane.b32.xlu1 %v494_v59, %s3081_s22  ;;  %v763_v41 = vmul.f32 %v755_v38, %v494_v59 }
 0x2e2   : > { %v483_v3 = vpop.permute.xlu0 %482 }
 0x2e3   : > { %v485_v4 = vmul.f32 %v2431_v54, %v483_v3 }
 0x2e5   : > { %v3250_v6 = vadd.f32 %v487_v57, %v485_v4 }
 0x2e7   : > { %2653 = vmatmul.mubr.msk.f32.vlgmr.msra.gmra.mrb[4].mxu1 %vm225_vm1, %v3250_v6  ;;  %v756_v54 = vmul.f32 %v755_v38, %v3250_v6 }
 0x2e8   : > { %2897 = vmatpush3.bf16.msra.mxu1 %v3143_v9  ;;  %2674 = vmatprep.mubr.msk.f32.mxu1 %vm3079_vm0, %v3080_v1 }
 0x2e9   : > { %2898 = vmatprep.subr.bf16.mxu1 %v3078_v0 }
 0x2ec   : > { %2900 = vmatpush3.bf16.msra.mxu1 %v3152_v13 }
 0x2ed   : > { %2907 = vmatprep.subr.bf16.mxu1 %v3078_v0 }
 0x2ef   : > { %2675 = vmatmul.mubr.msk.f32.vlgmr.msra.gmra.mrb[6].mxu1 %vm225_vm1, %v3267_v31 }
 0x2f0   : > { %2909 = vmatpush3.bf16.msra.mxu1 %v3137_v5  ;;  %2696 = vmatprep.mubr.msk.f32.mxu1 %vm3079_vm0, %v3080_v1 }
 0x2f1   : > { %2910 = vmatprep.subr.bf16.mxu1 %v3078_v0 }
 0x2f4   : > { %2912 = vmatpush3.bf16.msra.mxu1 %v3148_v12 }
 0x2f5   : > { %2919 = vmatprep.subr.bf16.mxu1 %v3078_v0 }
 0x2f9   : > { %v727_v25 = vpop.permute.xlu1 %726 }
 0x3ba   : > { %v714_v7 = vpop.f32.mrb[4].mxu1 }
 0x3bb   : > { %v718_v8 = vadd.f32 %v714_v7, %v642_v63  ;;  %v2654_v10 = vpop.f32.mrb[5].mxu1 }
 0x3bd   : > { %v719_v11 = vadd.f32 %v3202_v27, %v718_v8 }
 0x3bf   : > { %3028 = vtanh.f32 %v719_v11  ;;  %v720_v15 = vmul.f32 0.5, %v719_v11 }
 0x3c1   : > { %3030 = vtanh.f32 %v720_v15  ;;  %v2444_v15 = vld [vmem:[%s3157_s21 + $0x6] sm:$0x3] }
 0x3c2   : > { %v911_v47 = vpop.f32.mrb[6].mxu1 }
 0x3c3   : > { %v912_v49 = vadd.f32 %v911_v47, %v838_v44  ;;  %v2676_v51 = vpop.f32.mrb[7].mxu1 }
 0x3c9   : > { %v3029_v14 = vpop.eup %3028 }
 0x3ca   : > { %731 = vrot.lane.b32.xlu0 %v3029_v14, %s3081_s22  ;;  %v2445_v14 = vld [vmem:[%s3157_s21 + $0x8] sm:$0x3] }
 0x3cb   : > { %v3031_v19 = vpop.eup %3030  ;;  %2697 = vmatmul.mubr.msk.f32.vlgmr.msra.gmra.mrb[8].mxu1 %vm225_vm1, %v2445_v14 }
 0x3cc   : > { %v722_v20 = vmul.f32 0.5, %v3031_v19  ;;  %2921 = vmatpush3.bf16.msra.mxu1 %v3166_v17  ;;  %2718 = vmatprep.mubr.msk.f32.mxu1 %vm3079_vm0, %v3080_v1 }
 0x3cd   : > { %2922 = vmatprep.subr.bf16.mxu1 %v3078_v0 }
 0x3ce   : > { %v723_v22 = vadd.f32 0.5, %v722_v20  ;;  %v3087_v20 = vmov 5  }
 0x3d0   : > { %v729_v26 = vmul.f32 %v727_v25, %v723_v22  ;;  %2924 = vmatpush3.bf16.msra.mxu1 %v3181_v21 }
 0x3d1   : > { %2931 = vmatprep.subr.bf16.mxu1 %v3078_v0 }
 0x43c   : > { %v732_v23 = vpop.permute.xlu0 %731 }
 0x43d   : > { %v734_v24 = vmul.f32 %v732_v23, %v723_v22 }
 0x43f   : > { %736 = vrot.lane.b32.xlu0 %v734_v24, %s3081_s22 }
 0x49e   : > { %v1108_v34 = vpop.f32.mrb[8].mxu1 }
 0x4b1   : > { %v737_v28 = vpop.permute.xlu0 %736 }
 0x4b2   : > { %v739_v29 = vadd.f32 %v737_v28, %v729_v26 }
 0x4b4   : > { %3032 = vtanh.f32 %v739_v29 }
 0x4be   : > { %v3033_v32 = vpop.eup %3032 }
 0x4bf   : > { %742 = vrot.lane.b32.xlu1 %v3033_v32, %s3081_s22 }
 0x4c3   : > { %759 = vrot.lane.b32.xlu1 %v739_v29, %s3083_s27 }
 0x531   : > { %v743_v36 = vpop.permute.xlu1 %742 }
 0x532   : > { %v745_v37 = vmul.f32 %v743_v36, %v723_v22  ;;  %v1016_v22 = vsel %vm473_vm2, 2, %v3087_v20  ;;  %v2698_v36 = vpop.f32.mrb[9].mxu1 }
 0x533   : > { %vm1017_vm5 = vcmp.lt.s32.totalorder %v1016_v22, %v3245_v53 }
 0x534   : > { %751 = vrot.lane.b32.xlu0 %v745_v37, %s3084_s28  ;;  %v2443_v24 = vsel %vm1017_vm5, 1.0, %v3080_v1 }
 0x535   : > { %v760_v40 = vpop.permute.xlu1 %759  ;;  %v1025_v26 = vsub.f32 1.0, %v2443_v24 }
 0x536   : > { %v762_v42 = vmul.f32 %v2437_v35, %v760_v40 }
 0x538   : > { %v3292_v43 = vadd.f32 %v763_v41, %v762_v42 }
 0x53a   : > { %996 = vrot.lane.b32.xlu1 %v3292_v43, %s3081_s22  ;;  %v1033_v29 = vmul.f32 %v1025_v26, %v3292_v43 }
 0x5a6   : > { %v752_v52 = vpop.permute.xlu0 %751 }
 0x5a7   : > { %v754_v55 = vmul.f32 %v2437_v35, %v752_v52 }
 0x5a9   : > { %v3297_v56 = vadd.f32 %v756_v54, %v754_v55 }
 0x5ab   : > { %2686 = vmatmul.mubr.msk.f32.vlgmr.msra.gmra.mrb[8].mxu0 %vm225_vm1, %v3297_v56  ;;  %v1026_v41 = vmul.f32 %v1025_v26, %v3297_v56 }
 0x5ac   : > { %2915 = vmatpush3.bf16.msra.mxu0 %v3143_v9  ;;  %2707 = vmatprep.mubr.msk.f32.mxu0 %vm3079_vm0, %v3080_v1  ;;  %v997_v7 = vpop.permute.xlu1 %996 }
 0x5ad   : > { %2916 = vmatprep.subr.bf16.mxu0 %v3078_v0 }
 0x5b0   : > { %2918 = vmatpush3.bf16.msra.mxu0 %v3152_v13 }
 0x5b1   : > { %2925 = vmatprep.subr.bf16.mxu0 %v3078_v0 }
 0x5b3   : > { %2708 = vmatmul.mubr.msk.f32.vlgmr.msra.gmra.mrb[10].mxu0 %vm225_vm1, %v2444_v15 }
 0x5b4   : > { %2927 = vmatpush3.bf16.msra.mxu0 %v3137_v5  ;;  %2729 = vmatprep.mubr.msk.f32.mxu0 %vm3079_vm0, %v3080_v1 }
 0x5b5   : > { %2928 = vmatprep.subr.bf16.mxu0 %v3078_v0 }
 0x5b8   : > { %2930 = vmatpush3.bf16.msra.mxu0 %v3148_v12 }
 0x5b9   : > { %2937 = vmatprep.subr.bf16.mxu0 %v3078_v0 }
 0x5bb   : > { %2730 = vmatmul.mubr.msk.f32.vlgmr.msra.gmra.mrb[12].mxu0 %vm225_vm1, %v2444_v15 }
 0x5bc   : > { %2939 = vmatpush3.bf16.msra.mxu0 %v3166_v17  ;;  %2751 = vmatprep.mubr.msk.f32.mxu0 %vm3079_vm0, %v3080_v1 }
 0x5bd   : > { %2940 = vmatprep.subr.bf16.mxu0 %v3078_v0 }
 0x5c0   : > { %2942 = vmatpush3.bf16.msra.mxu0 %v3181_v21 }
 0x5c1   : > { %2949 = vmatprep.subr.bf16.mxu0 %v3078_v0 }
 0x67e   : > { %v984_v57 = vpop.f32.mrb[8].mxu0 }
 0x67f   : > { %v988_v58 = vadd.f32 %v984_v57, %v912_v49  ;;  %v2687_v59 = vpop.f32.mrb[9].mxu0 }
 0x681   : > { %v989_v60 = vadd.f32 %v3202_v27, %v988_v58 }
 0x683   : > { %3034 = vtanh.f32 %v989_v60  ;;  %v990_v62 = vmul.f32 0.5, %v989_v60 }
 0x685   : > { %3036 = vtanh.f32 %v990_v62 }
 0x686   : > { %v1181_v35 = vpop.f32.mrb[10].mxu0 }
 0x687   : > { %v1182_v37 = vadd.f32 %v1181_v35, %v1108_v34  ;;  %v2709_v38 = vpop.f32.mrb[11].mxu0 }
 0x68d   : > { %v3035_v61 = vpop.eup %3034 }
 0x68e   : > { %1001 = vrot.lane.b32.xlu0 %v3035_v61, %s3081_s22 }
 0x68f   : > { %v3037_v63 = vpop.eup %3036 }
 0x690   : > { %v992_v2 = vmul.f32 0.5, %v3037_v63  ;;  %v3088_v63 = vmov 4  }
 0x692   : > { %v993_v3 = vadd.f32 0.5, %v992_v2  ;;  %v1286_v2 = vsel %vm473_vm2, 3, %v3088_v63 }
 0x693   : > { %vm1287_vm6 = vcmp.lt.s32.totalorder %v1286_v2, %v3245_v53 }
 0x694   : > { %v999_v8 = vmul.f32 %v997_v7, %v993_v3 }
 0x700   : > { %v1002_v4 = vpop.permute.xlu0 %1001 }
 0x701   : > { %v1004_v6 = vmul.f32 %v1002_v4, %v993_v3 }
 0x703   : > { %1006 = vrot.lane.b32.xlu0 %v1004_v6, %s3081_s22 }
 0x775   : > { %v1007_v10 = vpop.permute.xlu0 %1006 }
 0x776   : > { %v1009_v11 = vadd.f32 %v1007_v10, %v999_v8 }
 0x778   : > { %3038 = vtanh.f32 %v1009_v11 }
 0x782   : > { %v3039_v19 = vpop.eup %3038 }
 0x783   : > { %1012 = vrot.lane.b32.xlu1 %v3039_v19, %s3081_s22 }
 0x787   : > { %1029 = vrot.lane.b32.xlu1 %v1009_v11, %s3083_s27  ;;  %v2449_v11 = vsel %vm1287_vm6, 1.0, %v3080_v1 }
 0x788   : > { %v1295_v15 = vsub.f32 1.0, %v2449_v11 }
 0x7f5   : > { %v1013_v23 = vpop.permute.xlu1 %1012 }
 0x7f6   : > { %v1015_v25 = vmul.f32 %v1013_v23, %v993_v3  ;;  %v1371_v3 = vpop.f32.mrb[12].mxu0 }
 0x7f7   : > { %v2731_v6 = vpop.f32.mrb[13].mxu0 }
 0x7f8   : > { %1021 = vrot.lane.b32.xlu0 %v1015_v25, %s3084_s28 }
 0x7f9   : > { %v1030_v28 = vpop.permute.xlu1 %1029 }
 0x7fa   : > { %v1032_v32 = vmul.f32 %v2443_v24, %v1030_v28 }
 0x7fc   : > { %v3341_v33 = vadd.f32 %v1033_v29, %v1032_v32 }
 0x7fe   : > { %1266 = vrot.lane.b32.xlu1 %v3341_v33, %s3081_s22  ;;  %v1303_v20 = vmul.f32 %v1295_v15, %v3341_v33 }
 0x86a   : > { %v1022_v40 = vpop.permute.xlu0 %1021 }
 0x86b   : > { %v1024_v42 = vmul.f32 %v2443_v24, %v1022_v40 }
 0x86d   : > { %v1027_v44 = vadd.f32 %v1026_v41, %v1024_v42 }
 0x86f   : > { %2719 = vmatmul.mubr.msk.f32.vlgmr.msra.gmra.mrb[10].mxu1 %vm225_vm1, %v1027_v44  ;;  %v1296_v25 = vmul.f32 %v1295_v15, %v1027_v44 }
 0x870   : > { %2933 = vmatpush3.bf16.msra.mxu1 %v3143_v9  ;;  %2740 = vmatprep.mubr.msk.f32.mxu1 %vm3079_vm0, %v3080_v1  ;;  %v1267_v58 = vpop.permute.xlu1 %1266 }
 0x871   : > { %2934 = vmatprep.subr.bf16.mxu1 %v3078_v0 }
 0x874   : > { %2936 = vmatpush3.bf16.msra.mxu1 %v3152_v13 }
 0x875   : > { %2943 = vmatprep.subr.bf16.mxu1 %v3078_v0 }
 0x877   : > { %2741 = vmatmul.mubr.msk.f32.vlgmr.msra.gmra.mrb[12].mxu1 %vm225_vm1, %v2445_v14 }
 0x878   : > { %2945 = vmatpush3.bf16.msra.mxu1 %v3137_v5  ;;  %2762 = vmatprep.mubr.msk.f32.mxu1 %vm3079_vm0, %v3080_v1 }
 0x879   : > { %2946 = vmatprep.subr.bf16.mxu1 %v3078_v0 }
 0x87c   : > { %2948 = vmatpush3.bf16.msra.mxu1 %v3148_v12 }
 0x87d   : > { %2955 = vmatprep.subr.bf16.mxu1 %v3078_v0 }
 0x87f   : > { %2763 = vmatmul.mubr.msk.f32.vlgmr.msra.gmra.mrb[14].mxu1 %vm225_vm1, %v3267_v31 }
 0x880   : > { %2957 = vmatpush3.bf16.msra.mxu1 %v3166_v17  ;;  %2784 = vmatprep.mubr.msk.f32.mxu1 %vm3079_vm0, %v3080_v1 }
 0x881   : > { %2958 = vmatprep.subr.bf16.mxu1 %v3078_v0 }
 0x884   : > { %2960 = vmatpush3.bf16.msra.mxu1 %v3181_v21 }
 0x885   : > { %2967 = vmatprep.subr.bf16.mxu1 %v3078_v0 }
 0x942   : > { %v1254_v43 = vpop.f32.mrb[10].mxu1 }
 0x943   : > { %v1258_v47 = vadd.f32 %v1254_v43, %v1182_v37  ;;  %v2720_v48 = vpop.f32.mrb[11].mxu1 }
 0x944   : > { %v3089_v48 = vmov 3  }
 0x945   : > { %v1259_v49 = vadd.f32 %v3202_v27, %v1258_v47 }
 0x947   : > { %3040 = vtanh.f32 %v1259_v49  ;;  %v1260_v31 = vmul.f32 0.5, %v1259_v49  ;;  %v1546_v49 = vsel %vm473_vm2, 4, %v3089_v48 }
 0x948   : > { %vm1547_vm7 = vcmp.lt.s32.totalorder %v1546_v49, %v3245_v53 }
 0x949   : > { %3042 = vtanh.f32 %v1260_v31 }
 0x94a   : > { %v1441_v4 = vpop.f32.mrb[12].mxu1 }
 0x94b   : > { %v1442_v7 = vadd.f32 %v1441_v4, %v1371_v3  ;;  %v2742_v8 = vpop.f32.mrb[13].mxu1 }
 0x951   : > { %v3041_v51 = vpop.eup %3040 }
 0x952   : > { %1271 = vrot.lane.b32.xlu0 %v3041_v51, %s3081_s22  ;;  %v1631_v51 = vpop.f32.mrb[14].mxu1 }
 0x953   : > { %v3043_v52 = vpop.eup %3042 }
 0x954   : > { %v1262_v54 = vmul.f32 0.5, %v3043_v52  ;;  %v2764_v52 = vpop.f32.mrb[15].mxu1 }
 0x956   : > { %v1263_v55 = vadd.f32 0.5, %v1262_v54 }
 0x958   : > { %v1269_v59 = vmul.f32 %v1267_v58, %v1263_v55 }
 0x9c4   : > { %v1272_v56 = vpop.permute.xlu0 %1271 }
 0x9c5   : > { %v1274_v57 = vmul.f32 %v1272_v56, %v1263_v55 }
 0x9c7   : > { %1276 = vrot.lane.b32.xlu0 %v1274_v57, %s3081_s22  ;;  %v2453_v57 = vsel %vm1547_vm7, 1.0, %v3080_v1 }
 0xa39   : > { %v1277_v60 = vpop.permute.xlu0 %1276 }
 0xa3a   : > { %v1279_v61 = vadd.f32 %v1277_v60, %v1269_v59  ;;  %v1555_v59 = vsub.f32 1.0, %v2453_v57 }
 0xa3c   : > { %3044 = vtanh.f32 %v1279_v61 }
 0xa46   : > { %v3045_v62 = vpop.eup %3044 }
 0xa47   : > { %1282 = vrot.lane.b32.xlu1 %v3045_v62, %s3081_s22 }
 0xa4b   : > { %1299 = vrot.lane.b32.xlu1 %v1279_v61, %s3083_s27 }
 0xab9   : > { %v1283_v10 = vpop.permute.xlu1 %1282 }
 0xaba   : > { %v1285_v14 = vmul.f32 %v1283_v10, %v1263_v55 }
 0xabc   : > { %1291 = vrot.lane.b32.xlu0 %v1285_v14, %s3084_s28 }
 0xabd   : > { %v1300_v19 = vpop.permute.xlu1 %1299 }
 0xabe   : > { %v1302_v22 = vmul.f32 %v2449_v11, %v1300_v19 }
 0xac0   : > { %v1304_v23 = vadd.f32 %v1303_v20, %v1302_v22 }
 0xac2   : > { %1526 = vrot.lane.b32.xlu1 %v1304_v23, %s3081_s22  ;;  %v1563_v61 = vmul.f32 %v1555_v59, %v1304_v23 }
 0xb2e   : > { %v1292_v24 = vpop.permute.xlu0 %1291 }
 0xb2f   : > { %v1294_v26 = vmul.f32 %v2449_v11, %v1292_v24  ;;  %v3090_v24 = vmov 2  }
 0xb31   : > { %v1297_v28 = vadd.f32 %v1296_v25, %v1294_v26  ;;  %v1806_v25 = vsel %vm473_vm2, 5, %v3090_v24 }
 0xb32   : > { %vm1807_vm8 = vcmp.lt.s32.totalorder %v1806_v25, %v3245_v53 }
 0xb33   : > { %2752 = vmatmul.mubr.msk.f32.vlgmr.msra.gmra.mrb[14].mxu0 %vm225_vm1, %v1297_v28  ;;  %v1556_v3 = vmul.f32 %v1555_v59, %v1297_v28 }
 0xb34   : > { %2951 = vmatpush3.bf16.msra.mxu0 %v3143_v9  ;;  %2773 = vmatprep.mubr.msk.f32.mxu0 %vm3079_vm0, %v3080_v1  ;;  %v1527_v41 = vpop.permute.xlu1 %1526 }
 0xb35   : > { %2952 = vmatprep.subr.bf16.mxu0 %v3078_v0 }
 0xb38   : > { %2954 = vmatpush3.bf16.msra.mxu0 %v3152_v13 }
 0xb39   : > { %2961 = vmatprep.subr.bf16.mxu0 %v3078_v0 }
 0xb3b   : > { %2774 = vmatmul.mubr.msk.f32.vlgmr.msra.gmra.mrb[16].mxu0 %vm225_vm1, %v3264_v30 }
 0xb3c   : > { %2963 = vmatpush3.bf16.msra.mxu0 %v3137_v5  ;;  %2795 = vmatprep.mubr.msk.f32.mxu0 %vm3079_vm0, %v3080_v1 }
 0xb3d   : > { %2964 = vmatprep.subr.bf16.mxu0 %v3078_v0 }
 0xb40   : > { %2966 = vmatpush3.bf16.msra.mxu0 %v3148_v12 }
 0xb41   : > { %2973 = vmatprep.subr.bf16.mxu0 %v3078_v0 }
 0xb43   : > { %2796 = vmatmul.mubr.msk.f32.vlgmr.msra.gmra.mrb[18].mxu0 %vm225_vm1, %v3221_v46 }
 0xb44   : > { %2975 = vmatpush3.bf16.msra.mxu0 %v3166_v17  ;;  %2817 = vmatprep.mubr.msk.f32.mxu0 %vm3079_vm0, %v3080_v1 }
 0xb45   : > { %2976 = vmatprep.subr.bf16.mxu0 %v3078_v0 }
 0xb48   : > { %2978 = vmatpush3.bf16.msra.mxu0 %v3181_v21 }
 0xb49   : > { %2985 = vmatprep.subr.bf16.mxu0 %v3078_v0 }
 0xc06   : > { %v1514_v30 = vpop.f32.mrb[14].mxu0 }
 0xc07   : > { %v1518_v29 = vadd.f32 %v1514_v30, %v1442_v7  ;;  %v2753_v32 = vpop.f32.mrb[15].mxu0 }
 0xc09   : > { %v1519_v33 = vadd.f32 %v3202_v27, %v1518_v29 }
 0xc0b   : > { %3046 = vtanh.f32 %v1519_v33  ;;  %v1520_v46 = vmul.f32 0.5, %v1519_v33 }
 0xc0d   : > { %3048 = vtanh.f32 %v1520_v46 }
 0xc0e   : > { %v1701_v31 = vpop.f32.mrb[16].mxu0 }
 0xc0f   : > { %v1702_v54 = vadd.f32 %v1701_v31, %v1631_v51  ;;  %v2775_v55 = vpop.f32.mrb[17].mxu0 }
 0xc15   : > { %v3047_v34 = vpop.eup %3046 }
 0xc16   : > { %1531 = vrot.lane.b32.xlu0 %v3047_v34, %s3081_s22  ;;  %v1891_v26 = vpop.f32.mrb[18].mxu0  ;;  %v2457_v34 = vsel %vm1807_vm8, 1.0, %v3080_v1 }
 0xc17   : > { %v3049_v35 = vpop.eup %3048  ;;  %v2797_v30 = vpop.f32.mrb[19].mxu0 }
 0xc18   : > { %v1522_v36 = vmul.f32 0.5, %v3049_v35  ;;  %v1815_v35 = vsub.f32 1.0, %v2457_v34 }
 0xc1a   : > { %v1523_v37 = vadd.f32 0.5, %v1522_v36 }
 0xc1c   : > { %v1529_v42 = vmul.f32 %v1527_v41, %v1523_v37 }
 0xc88   : > { %v1532_v38 = vpop.permute.xlu0 %1531 }
 0xc89   : > { %v1534_v40 = vmul.f32 %v1532_v38, %v1523_v37 }
 0xc8b   : > { %1536 = vrot.lane.b32.xlu0 %v1534_v40, %s3081_s22 }
 0xcfd   : > { %v1537_v44 = vpop.permute.xlu0 %1536 }
 0xcfe   : > { %v1539_v43 = vadd.f32 %v1537_v44, %v1529_v42 }
 0xd00   : > { %3050 = vtanh.f32 %v1539_v43 }
 0xd0a   : > { %v3051_v47 = vpop.eup %3050 }
 0xd0b   : > { %1542 = vrot.lane.b32.xlu1 %v3051_v47, %s3081_s22 }
 0xd0f   : > { %1559 = vrot.lane.b32.xlu1 %v1539_v43, %s3083_s27 }
 0xd7d   : > { %v1543_v56 = vpop.permute.xlu1 %1542 }
 0xd7e   : > { %v1545_v58 = vmul.f32 %v1543_v56, %v1523_v37 }
 0xd80   : > { %1551 = vrot.lane.b32.xlu0 %v1545_v58, %s3084_s28 }
 0xd81   : > { %v1560_v60 = vpop.permute.xlu1 %1559 }
 0xd82   : > { %v1562_v62 = vmul.f32 %v2453_v57, %v1560_v60  ;;  %v3091_v60 = vmov 1  }
 0xd84   : > { %v1564_v63 = vadd.f32 %v1563_v61, %v1562_v62  ;;  %v2066_v61 = vsel %vm473_vm2, 6, %v3091_v60 }
 0xd85   : > { %vm2067_vm9 = vcmp.lt.s32.totalorder %v2066_v61, %v3245_v53 }
 0xd86   : > { %1786 = vrot.lane.b32.xlu1 %v1564_v63, %s3081_s22  ;;  %v1823_v37 = vmul.f32 %v1815_v35, %v1564_v63 }
 0xdf2   : > { %v1552_v2 = vpop.permute.xlu0 %1551 }
 0xdf3   : > { %v1554_v4 = vmul.f32 %v2453_v57, %v1552_v2 }
 0xdf5   : > { %v1557_v6 = vadd.f32 %v1556_v3, %v1554_v4 }
 0xdf7   : > { %2785 = vmatmul.mubr.msk.f32.vlgmr.msra.gmra.mrb[16].mxu1 %vm225_vm1, %v1557_v6  ;;  %v1816_v42 = vmul.f32 %v1815_v35, %v1557_v6 }
 0xdf8   : > { %2969 = vmatpush3.bf16.msra.mxu1 %v3143_v9  ;;  %2806 = vmatprep.mubr.msk.f32.mxu1 %vm3079_vm0, %v3080_v1  ;;  %v1787_v19 = vpop.permute.xlu1 %1786 }
 0xdf9   : > { %2970 = vmatprep.subr.bf16.mxu1 %v3078_v0 }
 0xdfc   : > { %2972 = vmatpush3.bf16.msra.mxu1 %v3152_v13 }
 0xdfd   : > { %2979 = vmatprep.subr.bf16.mxu1 %v3078_v0 }
 0xdff   : > { %2807 = vmatmul.mubr.msk.f32.vlgmr.msra.gmra.mrb[18].mxu1 %vm225_vm1, %v3218_v45 }
 0xe00   : > { %2981 = vmatpush3.bf16.msra.mxu1 %v3137_v5  ;;  %2828 = vmatprep.mubr.msk.f32.mxu1 %vm3079_vm0, %v3080_v1 }
 0xe01   : > { %2982 = vmatprep.subr.bf16.mxu1 %v3078_v0 }
 0xe04   : > { %2984 = vmatpush3.bf16.msra.mxu1 %v3148_v12 }
 0xe05   : > { %2991 = vmatprep.subr.bf16.mxu1 %v3078_v0 }
 0xe07   : > { %2829 = vmatmul.mubr.msk.f32.vlgmr.msra.gmra.mrb[20].mxu1 %vm225_vm1, %v3171_v18 }
 0xe08   : > { %2993 = vmatpush3.bf16.msra.mxu1 %v3166_v17  ;;  %2850 = vmatprep.mubr.msk.f32.mxu1 %vm3079_vm0, %v3080_v1 }
 0xe09   : > { %2994 = vmatprep.subr.bf16.mxu1 %v3078_v0 }
 0xe0c   : > { %2996 = vmatpush3.bf16.msra.mxu1 %v3181_v21 }
 0xeca   : > { %v1774_v5 = vpop.f32.mrb[16].mxu1 }
 0xecb   : > { %v1778_v45 = vadd.f32 %v1774_v5, %v1702_v54  ;;  %v2786_v7 = vpop.f32.mrb[17].mxu1  ;;  %v2461_v5 = vsel %vm2067_vm9, 1.0, %v3080_v1 }
 0xecc   : > { %v2075_v7 = vsub.f32 1.0, %v2461_v5 }
 0xecd   : > { %v1779_v8 = vadd.f32 %v3202_v27, %v1778_v45 }
 0xecf   : > { %3052 = vtanh.f32 %v1779_v8  ;;  %v1780_v10 = vmul.f32 0.5, %v1779_v8 }
 0xed1   : > { %3054 = vtanh.f32 %v1780_v10 }
 0xed2   : > { %v1961_v28 = vpop.f32.mrb[18].mxu1 }
 0xed3   : > { %v1962_v29 = vadd.f32 %v1961_v28, %v1891_v26  ;;  %v2808_v32 = vpop.f32.mrb[19].mxu1 }
 0xed9   : > { %v3053_v12 = vpop.eup %3052 }
 0xeda   : > { %1791 = vrot.lane.b32.xlu0 %v3053_v12, %s3081_s22  ;;  %v2151_v62 = vpop.f32.mrb[20].mxu1 }
 0xedb   : > { %v3055_v18 = vpop.eup %3054  ;;  %v2830_v2 = vpop.f32.mrb[21].mxu1 }
 0xedc   : > { %v1782_v17 = vmul.f32 0.5, %v3055_v18 }
 0xede   : > { %v1783_v11 = vadd.f32 0.5, %v1782_v17  ;;  %v2326_v17 = vsel %vm473_vm2, 7, %v3082_v39 }
 0xedf   : > { %vm2327_vm10 = vcmp.lt.s32.totalorder %v2326_v17, %v3245_v53 }
 0xee0   : > { %v1789_v21 = vmul.f32 %v1787_v19, %v1783_v11 }
 0xf4c   : > { %v1792_v14 = vpop.permute.xlu0 %1791 }
 0xf4d   : > { %v1794_v15 = vmul.f32 %v1792_v14, %v1783_v11  ;;  %v2465_v14 = vsel %vm2327_vm10, 1.0, %v3080_v1 }
 0xf4f   : > { %1796 = vrot.lane.b32.xlu0 %v1794_v15, %s3081_s22 }
 0xfc1   : > { %v1797_v20 = vpop.permute.xlu0 %1796 }
 0xfc2   : > { %v1799_v22 = vadd.f32 %v1797_v20, %v1789_v21  ;;  %v2335_v20 = vsub.f32 1.0, %v2465_v14 }
 0xfc4   : > { %3056 = vtanh.f32 %v1799_v22 }
 0xfce   : > { %v3057_v23 = vpop.eup %3056 }
 0xfcf   : > { %1802 = vrot.lane.b32.xlu1 %v3057_v23, %s3081_s22 }
 0xfd3   : > { %1819 = vrot.lane.b32.xlu1 %v1799_v22, %s3083_s27 }
0x1041   : > { %v1803_v33 = vpop.permute.xlu1 %1802 }
0x1042   : > { %v1805_v46 = vmul.f32 %v1803_v33, %v1783_v11 }
0x1044   : > { %1811 = vrot.lane.b32.xlu0 %v1805_v46, %s3084_s28 }
0x1045   : > { %v1820_v36 = vpop.permute.xlu1 %1819 }
0x1046   : > { %v1822_v38 = vmul.f32 %v2457_v34, %v1820_v36 }
0x1048   : > { %v1824_v40 = vadd.f32 %v1823_v37, %v1822_v38 }
0x104a   : > { %2046 = vrot.lane.b32.xlu1 %v1824_v40, %s3081_s22  ;;  %v2083_v12 = vmul.f32 %v2075_v7, %v1824_v40 }
0x10b6   : > { %v1812_v41 = vpop.permute.xlu0 %1811 }
0x10b7   : > { %v1814_v44 = vmul.f32 %v2457_v34, %v1812_v41 }
0x10b9   : > { %v1817_v43 = vadd.f32 %v1816_v42, %v1814_v44 }
0x10bb   : > { %2818 = vmatmul.mubr.msk.f32.vlgmr.msra.gmra.mrb[20].mxu0 %vm225_vm1, %v1817_v43  ;;  %v2076_v15 = vmul.f32 %v2075_v7, %v1817_v43 }
0x10bc   : > { %2987 = vmatpush3.bf16.msra.mxu0 %v3143_v9  ;;  %2839 = vmatprep.mubr.msk.f32.mxu0 %vm3079_vm0, %v3080_v1 }
0x10bd   : > { %2988 = vmatprep.subr.bf16.mxu0 %v3078_v0 }
0x10c0   : > { %2990 = vmatpush3.bf16.msra.mxu0 %v3152_v13  ;;  %v2047_v13 = vpop.permute.xlu1 %2046 }
0x10c3   : > { %2840 = vmatmul.mubr.msk.f32.vlgmr.msra.gmra.mrb[22].mxu0 %vm225_vm1, %v3164_v16 }
0x118e   : > { %v2034_v47 = vpop.f32.mrb[20].mxu0 }
0x118f   : > { %v2038_v48 = vadd.f32 %v2034_v47, %v1962_v29  ;;  %v2819_v49 = vpop.f32.mrb[21].mxu0 }
0x1191   : > { %v2039_v51 = vadd.f32 %v3202_v27, %v2038_v48 }
0x1193   : > { %3058 = vtanh.f32 %v2039_v51  ;;  %v2040_v9 = vmul.f32 0.5, %v2039_v51 }
0x1195   : > { %3060 = vtanh.f32 %v2040_v9 }
0x1196   : > { %v2221_v63 = vpop.f32.mrb[22].mxu0 }
0x1197   : > { %v2222_v3 = vadd.f32 %v2221_v63, %v2151_v62  ;;  %v2841_v4 = vpop.f32.mrb[23].mxu0 }
0x119d   : > { %v3059_v31 = vpop.eup %3058 }
0x119e   : > { %2051 = vrot.lane.b32.xlu0 %v3059_v31, %s3081_s22 }
0x119f   : > { %v3061_v52 = vpop.eup %3060 }
0x11a0   : > { %v2042_v54 = vmul.f32 0.5, %v3061_v52 }
0x11a2   : > { %v2043_v55 = vadd.f32 0.5, %v2042_v54 }
0x11a4   : > { %v2049_v16 = vmul.f32 %v2047_v13, %v2043_v55 }
0x1210   : > { %v2052_v0 = vpop.permute.xlu0 %2051 }
0x1211   : > { %v2054_v56 = vmul.f32 %v2052_v0, %v2043_v55 }
0x1213   : > { %2056 = vrot.lane.b32.xlu0 %v2054_v56, %s3081_s22 }
0x1285   : > { %v2057_v57 = vpop.permute.xlu0 %2056 }
0x1286   : > { %v2059_v58 = vadd.f32 %v2057_v57, %v2049_v16 }
0x1288   : > { %3062 = vtanh.f32 %v2059_v58 }
0x1292   : > { %v3063_v59 = vpop.eup %3062 }
0x1293   : > { %2062 = vrot.lane.b32.xlu1 %v3063_v59, %s3081_s22 }
0x1297   : > { %2079 = vrot.lane.b32.xlu1 %v2059_v58, %s3083_s27 }
0x1305   : > { %v2063_v6 = vpop.permute.xlu1 %2062 }
0x1306   : > { %v2065_v45 = vmul.f32 %v2063_v6, %v2043_v55 }
0x1308   : > { %2071 = vrot.lane.b32.xlu0 %v2065_v45, %s3084_s28 }
0x1309   : > { %v2080_v8 = vpop.permute.xlu1 %2079 }
0x130a   : > { %v2082_v10 = vmul.f32 %v2461_v5, %v2080_v8 }
0x130c   : > { %v2084_v18 = vadd.f32 %v2083_v12, %v2082_v10 }
0x130e   : > { %2306 = vrot.lane.b32.xlu1 %v2084_v18, %s3081_s22 }
0x137a   : > { %v2072_v11 = vpop.permute.xlu0 %2071 }
0x137b   : > { %v2074_v19 = vmul.f32 %v2461_v5, %v2072_v11 }
0x137d   : > { %v2077_v21 = vadd.f32 %v2076_v15, %v2074_v19 }
0x137f   : > { %2851 = vmatmul.mubr.msk.f32.vlgmr.msra.gmra.mrb[22].mxu1 %vm225_vm1, %v2077_v21  ;;  %v2336_v22 = vmul.f32 %v2335_v20, %v2077_v21 }
0x1380   : > { %v2307_v32 = vpop.permute.xlu1 %2306 }
0x1452   : > { %v2294_v23 = vpop.f32.mrb[22].mxu1 }
0x1453   : > { %v2298_v24 = vadd.f32 %v2294_v23, %v2222_v3  ;;  %v2852_v25 = vpop.f32.mrb[23].mxu1 }
0x1455   : > { %v2299_v26 = vadd.f32 %v3202_v27, %v2298_v24 }
0x1457   : > { %3064 = vtanh.f32 %v2299_v26  ;;  %v2300_v39 = vmul.f32 0.5, %v2299_v26 }
0x1459   : > { %3066 = vtanh.f32 %v2300_v39 }
0x1461   : > { %v3065_v50 = vpop.eup %3064 }
0x1462   : > { %2311 = vrot.lane.b32.xlu0 %v3065_v50, %s3081_s22 }
0x1463   : > { %v3067_v53 = vpop.eup %3066 }
0x1464   : > { %v2302_v1 = vmul.f32 0.5, %v3067_v53 }
0x1466   : > { %v2303_v28 = vadd.f32 0.5, %v2302_v1 }
0x1468   : > { %v2309_v33 = vmul.f32 %v2307_v32, %v2303_v28 }
0x14d4   : > { %v2312_v30 = vpop.permute.xlu0 %2311 }
0x14d5   : > { %v2314_v29 = vmul.f32 %v2312_v30, %v2303_v28 }
0x14d7   : > { %2316 = vrot.lane.b32.xlu0 %v2314_v29, %s3081_s22 }
0x1549   : > { %v2317_v34 = vpop.permute.xlu0 %2316 }
0x154a   : > { %v2319_v46 = vadd.f32 %v2317_v34, %v2309_v33 }
0x154c   : > { %3068 = vtanh.f32 %v2319_v46 }
0x1556   : > { %v3069_v27 = vpop.eup %3068 }
0x1557   : > { %2322 = vrot.lane.b32.xlu1 %v3069_v27, %s3081_s22 }
0x15c9   : > { %v2323_v35 = vpop.permute.xlu1 %2322 }
0x15ca   : > { %v2325_v36 = vmul.f32 %v2323_v35, %v2303_v28 }
0x15cc   : > { %2331 = vrot.lane.b32.xlu0 %v2325_v36, %s3084_s28 }
0x163e   : > { %v2332_v37 = vpop.permute.xlu0 %2331 }
0x163f   : > { %v2334_v38 = vmul.f32 %v2465_v14, %v2332_v37 }
0x1641   : > { %v2337_v40 = vadd.f32 %v2336_v22, %v2334_v38 }
0x1643   : > { %2339 = vst.msk [vmem:[%s205_s4] sm:$0x3] %vm2338_vm11, %v2337_v40 }
0x1644 PF: > { %s13_s12 = sadd.s32 1, %s3076_s12  }
0x1645   : > { %p10_p4 = scmp.ge.s32.totalorder %s13_s12, 6  }
0x1647   :  { %12 = sbr.rel (!%p10_p4) target bundleno = 1 (0x1), region = 75 }

</bundles_post_ra>
